<compile_context>
chip_gen: v6e
topology: v6e:2x2x1
jax: 0.10.0
libtpu: 0.0.40
codegen_flags: <defaults>
</compile_context>

<pallas_src>
import jax
import jax.numpy as jnp
from jax.experimental import pallas as pl
from jax.experimental.pallas import tpu as pltpu

INPUT_DIM = 16      # (module default is 300; small synthetic size here)
HIDDEN_DIM = 32     # (module default is 64)
LSTM_LAYERS = 3     # (module default is 10)
SEQ_LEN = 8         # rows of the flattened x -> LSTM sequence length

FC_PAD = 128        # pad the 2-wide FC output to a full lane width


def lstm_flow_kernel(x_ref, y_ref, wih0_ref, wihl_ref, whh_ref, b_ref,
                     wfc_ref, bfc_ref, z_ref, ld_ref, h_scr):
    H = HIDDEN_DIM
    L = LSTM_LAYERS
    N = x_ref.shape[0]

    def cell(gates, c_prev):
        # gates: (1, 4H) = one 128-lane vreg, gate order [i | f | g | o].
        sig = jax.nn.sigmoid(gates)                 # i/f/o blocks (1 EUP push)
        g = jnp.tanh(gates[:, 2 * H:3 * H])         # g block      (1 EUP push)
        i = sig[:, 0:H]
        f = sig[:, H:2 * H]
        o = sig[:, 3 * H:4 * H]
        c = f * c_prev + i * g
        h = o * jnp.tanh(c)                         #              (1 EUP push)
        return h, c

    # Layer-0 hoisted input projection (+ bias): one (N, D) @ (D, 4H) matmul.
    xg = jnp.dot(x_ref[...], wih0_ref[...],
                 preferred_element_type=jnp.float32) + b_ref[0:1, :]   # (N, 4H) f32

    h = jnp.zeros((1, H), jnp.float32)
    for l in range(L):                  # layer-major: finish layer l, then l+1
        h = jnp.zeros((1, H), jnp.float32)
        c = jnp.zeros((1, H), jnp.float32)
        whh_l = whh_ref[l]              # (H, 4H) bf16, read at point of use
        last = (l == L - 1)
        # Time loop: N is static -> fully unrolled; only this dot is serial.
        for t in range(N):
            gates = xg[t:t + 1, :] + jnp.dot(
                h.astype(jnp.bfloat16), whh_l,
                preferred_element_type=jnp.float32)                     # (1, 4H)
            h, c = cell(gates, c)
            if not last:
                h_scr[t:t + 1, :] = h   # assemble h_l(0..N-1) in VMEM scratch
        if not last:
            # Next layer's hoisted input projection: one (N, H) @ (H, 4H) dot.
            xg = jnp.dot(h_scr[...].astype(jnp.bfloat16), wihl_ref[l],
                         preferred_element_type=jnp.float32) + b_ref[l + 1:l + 2, :]

    # FC head on h_n[-1]; wfc is padded to 128 output lanes (cols 0,1 live).
    params = jnp.dot(h.astype(jnp.bfloat16), wfc_ref[...],
                     preferred_element_type=jnp.float32) + bfc_ref[...]  # (1, FC_PAD)
    mu = params[:, 0:1]
    log_sigma = jnp.clip(params[:, 1:2], -3.0, 3.0)

    # Lane-dense (1, B) store; divide-free (single EUP exp instead of a divide).
    z_ref[...] = (y_ref[...] - mu) * jnp.exp(-log_sigma)
    # Explicit reduction (here length-1) to match -log_sigma.sum(dim=-1).
    ld_ref[...] = -jnp.sum(log_sigma, axis=-1, keepdims=True)


def init_params(key):
    """PyTorch-style uniform(-1/sqrt(H), 1/sqrt(H)) init; raw (unpadded) layout."""
    H, D, L = HIDDEN_DIM, INPUT_DIM, LSTM_LAYERS
    k = 1.0 / jnp.sqrt(jnp.float32(H))
    keys = jax.random.split(key, 6)
    u = lambda kk, shape: jax.random.uniform(kk, shape, jnp.float32, -k, k)

    wih0 = u(keys[0], (D, 4 * H))                        # W_ih^T, layer 0
    wihl = u(keys[1], (L - 1, H, 4 * H))                 # W_ih^T, layers 1..L-1
    whh = u(keys[2], (L, H, 4 * H))                      # W_hh^T, all layers
    b = u(keys[3], (L, 4 * H)) + u(keys[4], (L, 4 * H))  # b_ih + b_hh

    kfc_w, kfc_b = jax.random.split(keys[5])
    wfc_small = jax.random.uniform(kfc_w, (H, 2), jnp.float32, -k, k)
    bfc_small = jax.random.uniform(kfc_b, (2,), jnp.float32, -k, k)
    return dict(wih0=wih0, wihl=wihl, whh=whh, b=b,
                wfc_small=wfc_small, bfc_small=bfc_small)


def pack_params(p):
    """Kernel layout.

    With H = 32 the four gates exactly fill one 128-lane block in the natural
    PyTorch [i | f | g | o] column order, so the LSTM weights need NO padding
    or scattering.  Matmul weights are stored bf16 (f32 accumulation in the
    kernel); biases stay f32.  Only the FC head is padded to a 128-lane output
    (columns 0,1 live; padded columns must stay zero if weights are ever
    loaded from a checkpoint).
    """
    H = HIDDEN_DIM
    wfc_p = jnp.zeros((H, FC_PAD), jnp.bfloat16).at[:, :2].set(
        p["wfc_small"].astype(jnp.bfloat16))
    bfc_p = jnp.zeros((1, FC_PAD), jnp.float32).at[0, :2].set(p["bfc_small"])
    return dict(
        wih0_p=p["wih0"].astype(jnp.bfloat16),           # (D, 4H)
        wihl_p=p["wihl"].astype(jnp.bfloat16),           # (L-1, H, 4H)
        whh_p=p["whh"].astype(jnp.bfloat16),             # (L, H, 4H)
        b_p=p["b"].astype(jnp.float32),                  # (L, 4H)
        wfc_p=wfc_p,                                     # (H, FC_PAD)
        bfc_p=bfc_p)                                     # (1, FC_PAD)


def lstm_flow_forward(y, x, kp):
    """Pallas implementation of LSTMFlow.forward(y, x) using packed params."""
    x2 = x.reshape(x.shape[0], -1).astype(jnp.bfloat16)   # x.view(x.size(0), -1)
    y2 = y.astype(jnp.float32).reshape(1, -1)             # lane-dense (1, B)
    B = y2.shape[1]
    vmem = pl.BlockSpec(memory_space=pltpu.MemorySpace.VMEM)
    z_row, ld = pl.pallas_call(
        lstm_flow_kernel,
        out_shape=(jax.ShapeDtypeStruct((1, B), jnp.float32),
                   jax.ShapeDtypeStruct((1, 1), jnp.float32)),
        in_specs=[vmem] * 8,
        out_specs=(vmem, vmem),
        scratch_shapes=[pltpu.VMEM((SEQ_LEN, HIDDEN_DIM), jnp.float32)],
    )(x2, y2, kp["wih0_p"], kp["wihl_p"], kp["whh_p"], kp["b_p"],
      kp["wfc_p"], kp["bfc_p"])
    return z_row.reshape(-1, 1), ld[0, 0]


def lstm_flow_reference(y, x, kp):
    """Pure-JAX reference mirroring PyTorch LSTMFlow semantics and the kernel's
    bf16 weight / matmul-input quantization (accumulation stays f32)."""
    H, L, N = HIDDEN_DIM, LSTM_LAYERS, SEQ_LEN
    f32 = lambda a: a.astype(jnp.float32)
    q = lambda a: a.astype(jnp.bfloat16).astype(jnp.float32)

    x2 = q(x.reshape(x.shape[0], -1).astype(jnp.float32))
    wih = [f32(kp["wih0_p"])] + [f32(kp["wihl_p"][l]) for l in range(L - 1)]
    whh = [f32(kp["whh_p"][l]) for l in range(L)]
    b = kp["b_p"]

    def cell(g, c_prev):
        i = jax.nn.sigmoid(g[:, 0:H])
        f = jax.nn.sigmoid(g[:, H:2 * H])
        gg = jnp.tanh(g[:, 2 * H:3 * H])
        o = jax.nn.sigmoid(g[:, 3 * H:4 * H])
        c = f * c_prev + i * gg
        return o * jnp.tanh(c), c

    hs = [jnp.zeros((1, H), jnp.float32) for _ in range(L)]
    cs = [jnp.zeros((1, H), jnp.float32) for _ in range(L)]
    for t in range(N):
        inp = x2[t:t + 1, :]
        for l in range(L):
            gates = q(inp) @ wih[l] + q(hs[l]) @ whh[l] + b[l:l + 1, :]
            hs[l], cs[l] = cell(gates, cs[l])
            inp = hs[l]

    params = q(hs[-1]) @ f32(kp["wfc_p"]) + kp["bfc_p"]
    mu = params[:, 0:1]
    log_sigma = jnp.clip(params[:, 1:2], -3.0, 3.0)
    z = (y.astype(jnp.float32) - mu) / jnp.exp(log_sigma)
    return z, -jnp.sum(log_sigma)


if __name__ == "__main__":
    key = jax.random.PRNGKey(0)
    kparam, kx, ky = jax.random.split(key, 3)
    params = init_params(kparam)
    kernel_params = pack_params(params)

    # x has an extra spatial factorization; forward flattens it (x.view(N, -1)).
    x = jax.random.normal(kx, (SEQ_LEN, 4, INPUT_DIM // 4), jnp.float32)
    y = jax.random.normal(ky, (8, 1), jnp.float32)

    forward = jax.jit(lstm_flow_forward)   # fuse reshape/cast + amortize dispatch
    z, log_det = forward(y, x, kernel_params)
    jax.block_until_ready((z, log_det))

    z_ref, ld_ref = lstm_flow_reference(y, x, kernel_params)
    assert z.shape == z_ref.shape
    # bf16 matmul inputs are mirrored in the reference; remaining deltas are
    # accumulation order + EUP-vs-XLA transcendental approximation (~1e-6).
    assert jnp.allclose(z, z_ref, rtol=1e-3, atol=1e-4), "z mismatch"
    assert jnp.allclose(log_det, ld_ref, rtol=1e-3, atol=1e-4), "log_det mismatch"

    print("KERNEL_OK")
</pallas_src>

<mosaic_0001>
module attributes {stable_mosaic.version = 11 : i64} {
  func.func @lstm_flow_kernel(%arg0: memref<8x16xbf16, #tpu.memory_space<vmem>>, %arg1: memref<1x8xf32, #tpu.memory_space<vmem>>, %arg2: memref<16x128xbf16, #tpu.memory_space<vmem>>, %arg3: memref<2x32x128xbf16, #tpu.memory_space<vmem>>, %arg4: memref<3x32x128xbf16, #tpu.memory_space<vmem>>, %arg5: memref<3x128xf32, #tpu.memory_space<vmem>>, %arg6: memref<32x128xbf16, #tpu.memory_space<vmem>>, %arg7: memref<1x128xf32, #tpu.memory_space<vmem>>, %arg8: memref<1x8xf32, #tpu.memory_space<vmem>>, %arg9: memref<1x1xf32, #tpu.memory_space<vmem>>, %arg10: memref<8x32xf32, #tpu.memory_space<vmem>>) attributes {dimension_semantics = [], scalar_prefetch = 0 : i64, scratch_operands = 1 : i64, tpu.core_type = #tpu.core_type<tc>} {
    %c0 = arith.constant 0 : index
    %c0_0 = arith.constant 0 : index
    %0 = vector.load %arg0[%c0, %c0_0] : memref<8x16xbf16, #tpu.memory_space<vmem>>, vector<8x16xbf16>
    %c0_1 = arith.constant 0 : index
    %c0_2 = arith.constant 0 : index
    %1 = vector.load %arg2[%c0_1, %c0_2] : memref<16x128xbf16, #tpu.memory_space<vmem>>, vector<16x128xbf16>
    %cst = arith.constant dense<0.000000e+00> : vector<8x128xf32>
    %2 = tpu.matmul %0, %1, %cst {dimension_numbers = #tpu.dot_dimension_numbers<[1], [0], [0], [1], [0, 0, 1, 1], [], []>} : vector<8x16xbf16>, vector<16x128xbf16>, vector<8x128xf32> -> vector<8x128xf32>
    %c0_3 = arith.constant 0 : index
    %c0_4 = arith.constant 0 : index
    %3 = vector.load %arg5[%c0_3, %c0_4] : memref<3x128xf32, #tpu.memory_space<vmem>>, vector<1x128xf32>
    %4 = vector.broadcast %3 : vector<1x128xf32> to vector<8x128xf32>
    %5 = arith.addf %2, %4 : vector<8x128xf32>
    %cst_5 = arith.constant 0.000000e+00 : f32
    %6 = vector.broadcast %cst_5 : f32 to vector<1x32xf32>
    %cst_6 = arith.constant 0.000000e+00 : f32
    %7 = vector.broadcast %cst_6 : f32 to vector<1x32xf32>
    %c0_7 = arith.constant 0 : index
    %c0_8 = arith.constant 0 : index
    %c0_9 = arith.constant 0 : index
    %8 = vector.load %arg4[%c0_7, %c0_8, %c0_9] : memref<3x32x128xbf16, #tpu.memory_space<vmem>>, vector<1x32x128xbf16>
    %9 = vector.shape_cast %8 : vector<1x32x128xbf16> to vector<32x128xbf16>
    %10 = vector.extract_strided_slice %5 {offsets = [0, 0], sizes = [1, 128], strides = [1, 1]} : vector<8x128xf32> to vector<1x128xf32>
    %11 = arith.truncf %6 : vector<1x32xf32> to vector<1x32xbf16>
    %cst_10 = arith.constant dense<0.000000e+00> : vector<1x128xf32>
    %12 = tpu.matmul %11, %9, %cst_10 {dimension_numbers = #tpu.dot_dimension_numbers<[1], [0], [0], [1], [0, 0, 1, 1], [], []>} : vector<1x32xbf16>, vector<32x128xbf16>, vector<1x128xf32> -> vector<1x128xf32>
    %13 = arith.addf %10, %12 : vector<1x128xf32>
    %14 = arith.negf %13 : vector<1x128xf32>
    %15 = math.exp %14 : vector<1x128xf32>
    %cst_11 = arith.constant 1.000000e+00 : f32
    %16 = vector.broadcast %cst_11 : f32 to vector<1x128xf32>
    %17 = arith.addf %16, %15 : vector<1x128xf32>
    %18 = arith.divf %16, %17 : vector<1x128xf32>
    %19 = vector.extract_strided_slice %13 {offsets = [0, 64], sizes = [1, 32], strides = [1, 1]} : vector<1x128xf32> to vector<1x32xf32>
    %20 = math.tanh %19 : vector<1x32xf32>
    %21 = vector.extract_strided_slice %18 {offsets = [0, 0], sizes = [1, 32], strides = [1, 1]} : vector<1x128xf32> to vector<1x32xf32>
    %22 = vector.extract_strided_slice %18 {offsets = [0, 32], sizes = [1, 32], strides = [1, 1]} : vector<1x128xf32> to vector<1x32xf32>
    %23 = vector.extract_strided_slice %18 {offsets = [0, 96], sizes = [1, 32], strides = [1, 1]} : vector<1x128xf32> to vector<1x32xf32>
    %24 = arith.mulf %22, %7 : vector<1x32xf32>
    %25 = arith.mulf %21, %20 : vector<1x32xf32>
    %26 = arith.addf %24, %25 : vector<1x32xf32>
    %27 = math.tanh %26 : vector<1x32xf32>
    %28 = arith.mulf %23, %27 : vector<1x32xf32>
    %c0_12 = arith.constant 0 : index
    %c0_13 = arith.constant 0 : index
    %29 = vector.load %arg10[%c0_12, %c0_13] : memref<8x32xf32, #tpu.memory_space<vmem>>, vector<1x32xf32>
    tpu.vector_store %arg10[%c0_12, %c0_13], %28 {strides = array<i32>} : memref<8x32xf32, #tpu.memory_space<vmem>>, vector<1x32xf32>,
    %30 = vector.extract_strided_slice %5 {offsets = [1, 0], sizes = [1, 128], strides = [1, 1]} : vector<8x128xf32> to vector<1x128xf32>
    %31 = arith.truncf %28 : vector<1x32xf32> to vector<1x32xbf16>
    %cst_14 = arith.constant dense<0.000000e+00> : vector<1x128xf32>
    %32 = tpu.matmul %31, %9, %cst_14 {dimension_numbers = #tpu.dot_dimension_numbers<[1], [0], [0], [1], [0, 0, 1, 1], [], []>} : vector<1x32xbf16>, vector<32x128xbf16>, vector<1x128xf32> -> vector<1x128xf32>
    %33 = arith.addf %30, %32 : vector<1x128xf32>
    %34 = arith.negf %33 : vector<1x128xf32>
    %35 = math.exp %34 : vector<1x128xf32>
    %cst_15 = arith.constant 1.000000e+00 : f32
    %36 = vector.broadcast %cst_15 : f32 to vector<1x128xf32>
    %37 = arith.addf %36, %35 : vector<1x128xf32>
    %38 = arith.divf %36, %37 : vector<1x128xf32>
    %39 = vector.extract_strided_slice %33 {offsets = [0, 64], sizes = [1, 32], strides = [1, 1]} : vector<1x128xf32> to vector<1x32xf32>
    %40 = math.tanh %39 : vector<1x32xf32>
    %41 = vector.extract_strided_slice %38 {offsets = [0, 0], sizes = [1, 32], strides = [1, 1]} : vector<1x128xf32> to vector<1x32xf32>
    %42 = vector.extract_strided_slice %38 {offsets = [0, 32], sizes = [1, 32], strides = [1, 1]} : vector<1x128xf32> to vector<1x32xf32>
    %43 = vector.extract_strided_slice %38 {offsets = [0, 96], sizes = [1, 32], strides = [1, 1]} : vector<1x128xf32> to vector<1x32xf32>
    %44 = arith.mulf %42, %26 : vector<1x32xf32>
    %45 = arith.mulf %41, %40 : vector<1x32xf32>
    %46 = arith.addf %44, %45 : vector<1x32xf32>
    %47 = math.tanh %46 : vector<1x32xf32>
    %48 = arith.mulf %43, %47 : vector<1x32xf32>
    %c1 = arith.constant 1 : index
    %c0_16 = arith.constant 0 : index
    %49 = vector.load %arg10[%c1, %c0_16] : memref<8x32xf32, #tpu.memory_space<vmem>>, vector<1x32xf32>
    tpu.vector_store %arg10[%c1, %c0_16], %48 {strides = array<i32>} : memref<8x32xf32, #tpu.memory_space<vmem>>, vector<1x32xf32>,
    %50 = vector.extract_strided_slice %5 {offsets = [2, 0], sizes = [1, 128], strides = [1, 1]} : vector<8x128xf32> to vector<1x128xf32>
    %51 = arith.truncf %48 : vector<1x32xf32> to vector<1x32xbf16>
    %cst_17 = arith.constant dense<0.000000e+00> : vector<1x128xf32>
    %52 = tpu.matmul %51, %9, %cst_17 {dimension_numbers = #tpu.dot_dimension_numbers<[1], [0], [0], [1], [0, 0, 1, 1], [], []>} : vector<1x32xbf16>, vector<32x128xbf16>, vector<1x128xf32> -> vector<1x128xf32>
    %53 = arith.addf %50, %52 : vector<1x128xf32>
    %54 = arith.negf %53 : vector<1x128xf32>
    %55 = math.exp %54 : vector<1x128xf32>
    %cst_18 = arith.constant 1.000000e+00 : f32
    %56 = vector.broadcast %cst_18 : f32 to vector<1x128xf32>
    %57 = arith.addf %56, %55 : vector<1x128xf32>
    %58 = arith.divf %56, %57 : vector<1x128xf32>
    %59 = vector.extract_strided_slice %53 {offsets = [0, 64], sizes = [1, 32], strides = [1, 1]} : vector<1x128xf32> to vector<1x32xf32>
    %60 = math.tanh %59 : vector<1x32xf32>
    %61 = vector.extract_strided_slice %58 {offsets = [0, 0], sizes = [1, 32], strides = [1, 1]} : vector<1x128xf32> to vector<1x32xf32>
    %62 = vector.extract_strided_slice %58 {offsets = [0, 32], sizes = [1, 32], strides = [1, 1]} : vector<1x128xf32> to vector<1x32xf32>
    %63 = vector.extract_strided_slice %58 {offsets = [0, 96], sizes = [1, 32], strides = [1, 1]} : vector<1x128xf32> to vector<1x32xf32>
    %64 = arith.mulf %62, %46 : vector<1x32xf32>
    %65 = arith.mulf %61, %60 : vector<1x32xf32>
    %66 = arith.addf %64, %65 : vector<1x32xf32>
    %67 = math.tanh %66 : vector<1x32xf32>
    %68 = arith.mulf %63, %67 : vector<1x32xf32>
    %c2 = arith.constant 2 : index
    %c0_19 = arith.constant 0 : index
    %69 = vector.load %arg10[%c2, %c0_19] : memref<8x32xf32, #tpu.memory_space<vmem>>, vector<1x32xf32>
    tpu.vector_store %arg10[%c2, %c0_19], %68 {strides = array<i32>} : memref<8x32xf32, #tpu.memory_space<vmem>>, vector<1x32xf32>,
    %70 = vector.extract_strided_slice %5 {offsets = [3, 0], sizes = [1, 128], strides = [1, 1]} : vector<8x128xf32> to vector<1x128xf32>
    %71 = arith.truncf %68 : vector<1x32xf32> to vector<1x32xbf16>
    %cst_20 = arith.constant dense<0.000000e+00> : vector<1x128xf32>
    %72 = tpu.matmul %71, %9, %cst_20 {dimension_numbers = #tpu.dot_dimension_numbers<[1], [0], [0], [1], [0, 0, 1, 1], [], []>} : vector<1x32xbf16>, vector<32x128xbf16>, vector<1x128xf32> -> vector<1x128xf32>
    %73 = arith.addf %70, %72 : vector<1x128xf32>
    %74 = arith.negf %73 : vector<1x128xf32>
    %75 = math.exp %74 : vector<1x128xf32>
    %cst_21 = arith.constant 1.000000e+00 : f32
    %76 = vector.broadcast %cst_21 : f32 to vector<1x128xf32>
    %77 = arith.addf %76, %75 : vector<1x128xf32>
    %78 = arith.divf %76, %77 : vector<1x128xf32>
    %79 = vector.extract_strided_slice %73 {offsets = [0, 64], sizes = [1, 32], strides = [1, 1]} : vector<1x128xf32> to vector<1x32xf32>
    %80 = math.tanh %79 : vector<1x32xf32>
    %81 = vector.extract_strided_slice %78 {offsets = [0, 0], sizes = [1, 32], strides = [1, 1]} : vector<1x128xf32> to vector<1x32xf32>
    %82 = vector.extract_strided_slice %78 {offsets = [0, 32], sizes = [1, 32], strides = [1, 1]} : vector<1x128xf32> to vector<1x32xf32>
    %83 = vector.extract_strided_slice %78 {offsets = [0, 96], sizes = [1, 32], strides = [1, 1]} : vector<1x128xf32> to vector<1x32xf32>
    %84 = arith.mulf %82, %66 : vector<1x32xf32>
    %85 = arith.mulf %81, %80 : vector<1x32xf32>
    %86 = arith.addf %84, %85 : vector<1x32xf32>
    %87 = math.tanh %86 : vector<1x32xf32>
    %88 = arith.mulf %83, %87 : vector<1x32xf32>
    %c3 = arith.constant 3 : index
    %c0_22 = arith.constant 0 : index
    %89 = vector.load %arg10[%c3, %c0_22] : memref<8x32xf32, #tpu.memory_space<vmem>>, vector<1x32xf32>
    tpu.vector_store %arg10[%c3, %c0_22], %88 {strides = array<i32>} : memref<8x32xf32, #tpu.memory_space<vmem>>, vector<1x32xf32>,
    %90 = vector.extract_strided_slice %5 {offsets = [4, 0], sizes = [1, 128], strides = [1, 1]} : vector<8x128xf32> to vector<1x128xf32>
    %91 = arith.truncf %88 : vector<1x32xf32> to vector<1x32xbf16>
    %cst_23 = arith.constant dense<0.000000e+00> : vector<1x128xf32>
    %92 = tpu.matmul %91, %9, %cst_23 {dimension_numbers = #tpu.dot_dimension_numbers<[1], [0], [0], [1], [0, 0, 1, 1], [], []>} : vector<1x32xbf16>, vector<32x128xbf16>, vector<1x128xf32> -> vector<1x128xf32>
    %93 = arith.addf %90, %92 : vector<1x128xf32>
    %94 = arith.negf %93 : vector<1x128xf32>
    %95 = math.exp %94 : vector<1x128xf32>
    %cst_24 = arith.constant 1.000000e+00 : f32
    %96 = vector.broadcast %cst_24 : f32 to vector<1x128xf32>
    %97 = arith.addf %96, %95 : vector<1x128xf32>
    %98 = arith.divf %96, %97 : vector<1x128xf32>
    %99 = vector.extract_strided_slice %93 {offsets = [0, 64], sizes = [1, 32], strides = [1, 1]} : vector<1x128xf32> to vector<1x32xf32>
    %100 = math.tanh %99 : vector<1x32xf32>
    %101 = vector.extract_strided_slice %98 {offsets = [0, 0], sizes = [1, 32], strides = [1, 1]} : vector<1x128xf32> to vector<1x32xf32>
    %102 = vector.extract_strided_slice %98 {offsets = [0, 32], sizes = [1, 32], strides = [1, 1]} : vector<1x128xf32> to vector<1x32xf32>
    %103 = vector.extract_strided_slice %98 {offsets = [0, 96], sizes = [1, 32], strides = [1, 1]} : vector<1x128xf32> to vector<1x32xf32>
    %104 = arith.mulf %102, %86 : vector<1x32xf32>
    %105 = arith.mulf %101, %100 : vector<1x32xf32>
    %106 = arith.addf %104, %105 : vector<1x32xf32>
    %107 = math.tanh %106 : vector<1x32xf32>
    %108 = arith.mulf %103, %107 : vector<1x32xf32>
    %c4 = arith.constant 4 : index
    %c0_25 = arith.constant 0 : index
    %109 = vector.load %arg10[%c4, %c0_25] : memref<8x32xf32, #tpu.memory_space<vmem>>, vector<1x32xf32>
    tpu.vector_store %arg10[%c4, %c0_25], %108 {strides = array<i32>} : memref<8x32xf32, #tpu.memory_space<vmem>>, vector<1x32xf32>,
    %110 = vector.extract_strided_slice %5 {offsets = [5, 0], sizes = [1, 128], strides = [1, 1]} : vector<8x128xf32> to vector<1x128xf32>
    %111 = arith.truncf %108 : vector<1x32xf32> to vector<1x32xbf16>
    %cst_26 = arith.constant dense<0.000000e+00> : vector<1x128xf32>
    %112 = tpu.matmul %111, %9, %cst_26 {dimension_numbers = #tpu.dot_dimension_numbers<[1], [0], [0], [1], [0, 0, 1, 1], [], []>} : vector<1x32xbf16>, vector<32x128xbf16>, vector<1x128xf32> -> vector<1x128xf32>
    %113 = arith.addf %110, %112 : vector<1x128xf32>
    %114 = arith.negf %113 : vector<1x128xf32>
    %115 = math.exp %114 : vector<1x128xf32>
    %cst_27 = arith.constant 1.000000e+00 : f32
    %116 = vector.broadcast %cst_27 : f32 to vector<1x128xf32>
    %117 = arith.addf %116, %115 : vector<1x128xf32>
    %118 = arith.divf %116, %117 : vector<1x128xf32>
    %119 = vector.extract_strided_slice %113 {offsets = [0, 64], sizes = [1, 32], strides = [1, 1]} : vector<1x128xf32> to vector<1x32xf32>
    %120 = math.tanh %119 : vector<1x32xf32>
    %121 = vector.extract_strided_slice %118 {offsets = [0, 0], sizes = [1, 32], strides = [1, 1]} : vector<1x128xf32> to vector<1x32xf32>
    %122 = vector.extract_strided_slice %118 {offsets = [0, 32], sizes = [1, 32], strides = [1, 1]} : vector<1x128xf32> to vector<1x32xf32>
    %123 = vector.extract_strided_slice %118 {offsets = [0, 96], sizes = [1, 32], strides = [1, 1]} : vector<1x128xf32> to vector<1x32xf32>
    %124 = arith.mulf %122, %106 : vector<1x32xf32>
    %125 = arith.mulf %121, %120 : vector<1x32xf32>
    %126 = arith.addf %124, %125 : vector<1x32xf32>
    %127 = math.tanh %126 : vector<1x32xf32>
    %128 = arith.mulf %123, %127 : vector<1x32xf32>
    %c5 = arith.constant 5 : index
    %c0_28 = arith.constant 0 : index
    %129 = vector.load %arg10[%c5, %c0_28] : memref<8x32xf32, #tpu.memory_space<vmem>>, vector<1x32xf32>
    tpu.vector_store %arg10[%c5, %c0_28], %128 {strides = array<i32>} : memref<8x32xf32, #tpu.memory_space<vmem>>, vector<1x32xf32>,
    %130 = vector.extract_strided_slice %5 {offsets = [6, 0], sizes = [1, 128], strides = [1, 1]} : vector<8x128xf32> to vector<1x128xf32>
    %131 = arith.truncf %128 : vector<1x32xf32> to vector<1x32xbf16>
    %cst_29 = arith.constant dense<0.000000e+00> : vector<1x128xf32>
    %132 = tpu.matmul %131, %9, %cst_29 {dimension_numbers = #tpu.dot_dimension_numbers<[1], [0], [0], [1], [0, 0, 1, 1], [], []>} : vector<1x32xbf16>, vector<32x128xbf16>, vector<1x128xf32> -> vector<1x128xf32>
    %133 = arith.addf %130, %132 : vector<1x128xf32>
    %134 = arith.negf %133 : vector<1x128xf32>
    %135 = math.exp %134 : vector<1x128xf32>
    %cst_30 = arith.constant 1.000000e+00 : f32
    %136 = vector.broadcast %cst_30 : f32 to vector<1x128xf32>
    %137 = arith.addf %136, %135 : vector<1x128xf32>
    %138 = arith.divf %136, %137 : vector<1x128xf32>
    %139 = vector.extract_strided_slice %133 {offsets = [0, 64], sizes = [1, 32], strides = [1, 1]} : vector<1x128xf32> to vector<1x32xf32>
    %140 = math.tanh %139 : vector<1x32xf32>
    %141 = vector.extract_strided_slice %138 {offsets = [0, 0], sizes = [1, 32], strides = [1, 1]} : vector<1x128xf32> to vector<1x32xf32>
    %142 = vector.extract_strided_slice %138 {offsets = [0, 32], sizes = [1, 32], strides = [1, 1]} : vector<1x128xf32> to vector<1x32xf32>
    %143 = vector.extract_strided_slice %138 {offsets = [0, 96], sizes = [1, 32], strides = [1, 1]} : vector<1x128xf32> to vector<1x32xf32>
    %144 = arith.mulf %142, %126 : vector<1x32xf32>
    %145 = arith.mulf %141, %140 : vector<1x32xf32>
    %146 = arith.addf %144, %145 : vector<1x32xf32>
    %147 = math.tanh %146 : vector<1x32xf32>
    %148 = arith.mulf %143, %147 : vector<1x32xf32>
    %c6 = arith.constant 6 : index
    %c0_31 = arith.constant 0 : index
    %149 = vector.load %arg10[%c6, %c0_31] : memref<8x32xf32, #tpu.memory_space<vmem>>, vector<1x32xf32>
    tpu.vector_store %arg10[%c6, %c0_31], %148 {strides = array<i32>} : memref<8x32xf32, #tpu.memory_space<vmem>>, vector<1x32xf32>,
    %150 = vector.extract_strided_slice %5 {offsets = [7, 0], sizes = [1, 128], strides = [1, 1]} : vector<8x128xf32> to vector<1x128xf32>
    %151 = arith.truncf %148 : vector<1x32xf32> to vector<1x32xbf16>
    %cst_32 = arith.constant dense<0.000000e+00> : vector<1x128xf32>
    %152 = tpu.matmul %151, %9, %cst_32 {dimension_numbers = #tpu.dot_dimension_numbers<[1], [0], [0], [1], [0, 0, 1, 1], [], []>} : vector<1x32xbf16>, vector<32x128xbf16>, vector<1x128xf32> -> vector<1x128xf32>
    %153 = arith.addf %150, %152 : vector<1x128xf32>
    %154 = arith.negf %153 : vector<1x128xf32>
    %155 = math.exp %154 : vector<1x128xf32>
    %cst_33 = arith.constant 1.000000e+00 : f32
    %156 = vector.broadcast %cst_33 : f32 to vector<1x128xf32>
    %157 = arith.addf %156, %155 : vector<1x128xf32>
    %158 = arith.divf %156, %157 : vector<1x128xf32>
    %159 = vector.extract_strided_slice %153 {offsets = [0, 64], sizes = [1, 32], strides = [1, 1]} : vector<1x128xf32> to vector<1x32xf32>
    %160 = math.tanh %159 : vector<1x32xf32>
    %161 = vector.extract_strided_slice %158 {offsets = [0, 0], sizes = [1, 32], strides = [1, 1]} : vector<1x128xf32> to vector<1x32xf32>
    %162 = vector.extract_strided_slice %158 {offsets = [0, 32], sizes = [1, 32], strides = [1, 1]} : vector<1x128xf32> to vector<1x32xf32>
    %163 = vector.extract_strided_slice %158 {offsets = [0, 96], sizes = [1, 32], strides = [1, 1]} : vector<1x128xf32> to vector<1x32xf32>
    %164 = arith.mulf %162, %146 : vector<1x32xf32>
    %165 = arith.mulf %161, %160 : vector<1x32xf32>
    %166 = arith.addf %164, %165 : vector<1x32xf32>
    %167 = math.tanh %166 : vector<1x32xf32>
    %168 = arith.mulf %163, %167 : vector<1x32xf32>
    %c7 = arith.constant 7 : index
    %c0_34 = arith.constant 0 : index
    %169 = vector.load %arg10[%c7, %c0_34] : memref<8x32xf32, #tpu.memory_space<vmem>>, vector<1x32xf32>
    tpu.vector_store %arg10[%c7, %c0_34], %168 {strides = array<i32>} : memref<8x32xf32, #tpu.memory_space<vmem>>, vector<1x32xf32>,
    %c0_35 = arith.constant 0 : index
    %c0_36 = arith.constant 0 : index
    %170 = vector.load %arg10[%c0_35, %c0_36] : memref<8x32xf32, #tpu.memory_space<vmem>>, vector<8x32xf32>
    %171 = arith.truncf %170 : vector<8x32xf32> to vector<8x32xbf16>
    %c0_37 = arith.constant 0 : index
    %c0_38 = arith.constant 0 : index
    %c0_39 = arith.constant 0 : index
    %172 = vector.load %arg3[%c0_37, %c0_38, %c0_39] : memref<2x32x128xbf16, #tpu.memory_space<vmem>>, vector<1x32x128xbf16>
    %173 = vector.shape_cast %172 : vector<1x32x128xbf16> to vector<32x128xbf16>
    %cst_40 = arith.constant dense<0.000000e+00> : vector<8x128xf32>
    %174 = tpu.matmul %171, %173, %cst_40 {dimension_numbers = #tpu.dot_dimension_numbers<[1], [0], [0], [1], [0, 0, 1, 1], [], []>} : vector<8x32xbf16>, vector<32x128xbf16>, vector<8x128xf32> -> vector<8x128xf32>
    %c1_41 = arith.constant 1 : index
    %c0_42 = arith.constant 0 : index
    %175 = vector.load %arg5[%c1_41, %c0_42] : memref<3x128xf32, #tpu.memory_space<vmem>>, vector<1x128xf32>
    %176 = vector.broadcast %175 : vector<1x128xf32> to vector<8x128xf32>
    %177 = arith.addf %174, %176 : vector<8x128xf32>
    %cst_43 = arith.constant 0.000000e+00 : f32
    %178 = vector.broadcast %cst_43 : f32 to vector<1x32xf32>
    %cst_44 = arith.constant 0.000000e+00 : f32
    %179 = vector.broadcast %cst_44 : f32 to vector<1x32xf32>
    %c1_45 = arith.constant 1 : index
    %c0_46 = arith.constant 0 : index
    %c0_47 = arith.constant 0 : index
    %180 = vector.load %arg4[%c1_45, %c0_46, %c0_47] : memref<3x32x128xbf16, #tpu.memory_space<vmem>>, vector<1x32x128xbf16>
    %181 = vector.shape_cast %180 : vector<1x32x128xbf16> to vector<32x128xbf16>
    %182 = vector.extract_strided_slice %177 {offsets = [0, 0], sizes = [1, 128], strides = [1, 1]} : vector<8x128xf32> to vector<1x128xf32>
    %183 = arith.truncf %178 : vector<1x32xf32> to vector<1x32xbf16>
    %cst_48 = arith.constant dense<0.000000e+00> : vector<1x128xf32>
    %184 = tpu.matmul %183, %181, %cst_48 {dimension_numbers = #tpu.dot_dimension_numbers<[1], [0], [0], [1], [0, 0, 1, 1], [], []>} : vector<1x32xbf16>, vector<32x128xbf16>, vector<1x128xf32> -> vector<1x128xf32>
    %185 = arith.addf %182, %184 : vector<1x128xf32>
    %186 = arith.negf %185 : vector<1x128xf32>
    %187 = math.exp %186 : vector<1x128xf32>
    %cst_49 = arith.constant 1.000000e+00 : f32
    %188 = vector.broadcast %cst_49 : f32 to vector<1x128xf32>
    %189 = arith.addf %188, %187 : vector<1x128xf32>
    %190 = arith.divf %188, %189 : vector<1x128xf32>
    %191 = vector.extract_strided_slice %185 {offsets = [0, 64], sizes = [1, 32], strides = [1, 1]} : vector<1x128xf32> to vector<1x32xf32>
    %192 = math.tanh %191 : vector<1x32xf32>
    %193 = vector.extract_strided_slice %190 {offsets = [0, 0], sizes = [1, 32], strides = [1, 1]} : vector<1x128xf32> to vector<1x32xf32>
    %194 = vector.extract_strided_slice %190 {offsets = [0, 32], sizes = [1, 32], strides = [1, 1]} : vector<1x128xf32> to vector<1x32xf32>
    %195 = vector.extract_strided_slice %190 {offsets = [0, 96], sizes = [1, 32], strides = [1, 1]} : vector<1x128xf32> to vector<1x32xf32>
    %196 = arith.mulf %194, %179 : vector<1x32xf32>
    %197 = arith.mulf %193, %192 : vector<1x32xf32>
    %198 = arith.addf %196, %197 : vector<1x32xf32>
    %199 = math.tanh %198 : vector<1x32xf32>
    %200 = arith.mulf %195, %199 : vector<1x32xf32>
    %c0_50 = arith.constant 0 : index
    %c0_51 = arith.constant 0 : index
    %201 = vector.load %arg10[%c0_50, %c0_51] : memref<8x32xf32, #tpu.memory_space<vmem>>, vector<1x32xf32>
    tpu.vector_store %arg10[%c0_50, %c0_51], %200 {strides = array<i32>} : memref<8x32xf32, #tpu.memory_space<vmem>>, vector<1x32xf32>,
    %202 = vector.extract_strided_slice %177 {offsets = [1, 0], sizes = [1, 128], strides = [1, 1]} : vector<8x128xf32> to vector<1x128xf32>
    %203 = arith.truncf %200 : vector<1x32xf32> to vector<1x32xbf16>
    %cst_52 = arith.constant dense<0.000000e+00> : vector<1x128xf32>
    %204 = tpu.matmul %203, %181, %cst_52 {dimension_numbers = #tpu.dot_dimension_numbers<[1], [0], [0], [1], [0, 0, 1, 1], [], []>} : vector<1x32xbf16>, vector<32x128xbf16>, vector<1x128xf32> -> vector<1x128xf32>
    %205 = arith.addf %202, %204 : vector<1x128xf32>
    %206 = arith.negf %205 : vector<1x128xf32>
    %207 = math.exp %206 : vector<1x128xf32>
    %cst_53 = arith.constant 1.000000e+00 : f32
    %208 = vector.broadcast %cst_53 : f32 to vector<1x128xf32>
    %209 = arith.addf %208, %207 : vector<1x128xf32>
    %210 = arith.divf %208, %209 : vector<1x128xf32>
    %211 = vector.extract_strided_slice %205 {offsets = [0, 64], sizes = [1, 32], strides = [1, 1]} : vector<1x128xf32> to vector<1x32xf32>
    %212 = math.tanh %211 : vector<1x32xf32>
    %213 = vector.extract_strided_slice %210 {offsets = [0, 0], sizes = [1, 32], strides = [1, 1]} : vector<1x128xf32> to vector<1x32xf32>
    %214 = vector.extract_strided_slice %210 {offsets = [0, 32], sizes = [1, 32], strides = [1, 1]} : vector<1x128xf32> to vector<1x32xf32>
    %215 = vector.extract_strided_slice %210 {offsets = [0, 96], sizes = [1, 32], strides = [1, 1]} : vector<1x128xf32> to vector<1x32xf32>
    %216 = arith.mulf %214, %198 : vector<1x32xf32>
    %217 = arith.mulf %213, %212 : vector<1x32xf32>
    %218 = arith.addf %216, %217 : vector<1x32xf32>
    %219 = math.tanh %218 : vector<1x32xf32>
    %220 = arith.mulf %215, %219 : vector<1x32xf32>
    %c1_54 = arith.constant 1 : index
    %c0_55 = arith.constant 0 : index
    %221 = vector.load %arg10[%c1_54, %c0_55] : memref<8x32xf32, #tpu.memory_space<vmem>>, vector<1x32xf32>
    tpu.vector_store %arg10[%c1_54, %c0_55], %220 {strides = array<i32>} : memref<8x32xf32, #tpu.memory_space<vmem>>, vector<1x32xf32>,
    %222 = vector.extract_strided_slice %177 {offsets = [2, 0], sizes = [1, 128], strides = [1, 1]} : vector<8x128xf32> to vector<1x128xf32>
    %223 = arith.truncf %220 : vector<1x32xf32> to vector<1x32xbf16>
    %cst_56 = arith.constant dense<0.000000e+00> : vector<1x128xf32>
    %224 = tpu.matmul %223, %181, %cst_56 {dimension_numbers = #tpu.dot_dimension_numbers<[1], [0], [0], [1], [0, 0, 1, 1], [], []>} : vector<1x32xbf16>, vector<32x128xbf16>, vector<1x128xf32> -> vector<1x128xf32>
    %225 = arith.addf %222, %224 : vector<1x128xf32>
    %226 = arith.negf %225 : vector<1x128xf32>
    %227 = math.exp %226 : vector<1x128xf32>
    %cst_57 = arith.constant 1.000000e+00 : f32
    %228 = vector.broadcast %cst_57 : f32 to vector<1x128xf32>
    %229 = arith.addf %228, %227 : vector<1x128xf32>
    %230 = arith.divf %228, %229 : vector<1x128xf32>
    %231 = vector.extract_strided_slice %225 {offsets = [0, 64], sizes = [1, 32], strides = [1, 1]} : vector<1x128xf32> to vector<1x32xf32>
    %232 = math.tanh %231 : vector<1x32xf32>
    %233 = vector.extract_strided_slice %230 {offsets = [0, 0], sizes = [1, 32], strides = [1, 1]} : vector<1x128xf32> to vector<1x32xf32>
    %234 = vector.extract_strided_slice %230 {offsets = [0, 32], sizes = [1, 32], strides = [1, 1]} : vector<1x128xf32> to vector<1x32xf32>
    %235 = vector.extract_strided_slice %230 {offsets = [0, 96], sizes = [1, 32], strides = [1, 1]} : vector<1x128xf32> to vector<1x32xf32>
    %236 = arith.mulf %234, %218 : vector<1x32xf32>
    %237 = arith.mulf %233, %232 : vector<1x32xf32>
    %238 = arith.addf %236, %237 : vector<1x32xf32>
    %239 = math.tanh %238 : vector<1x32xf32>
    %240 = arith.mulf %235, %239 : vector<1x32xf32>
    %c2_58 = arith.constant 2 : index
    %c0_59 = arith.constant 0 : index
    %241 = vector.load %arg10[%c2_58, %c0_59] : memref<8x32xf32, #tpu.memory_space<vmem>>, vector<1x32xf32>
    tpu.vector_store %arg10[%c2_58, %c0_59], %240 {strides = array<i32>} : memref<8x32xf32, #tpu.memory_space<vmem>>, vector<1x32xf32>,
    %242 = vector.extract_strided_slice %177 {offsets = [3, 0], sizes = [1, 128], strides = [1, 1]} : vector<8x128xf32> to vector<1x128xf32>
    %243 = arith.truncf %240 : vector<1x32xf32> to vector<1x32xbf16>
    %cst_60 = arith.constant dense<0.000000e+00> : vector<1x128xf32>
    %244 = tpu.matmul %243, %181, %cst_60 {dimension_numbers = #tpu.dot_dimension_numbers<[1], [0], [0], [1], [0, 0, 1, 1], [], []>} : vector<1x32xbf16>, vector<32x128xbf16>, vector<1x128xf32> -> vector<1x128xf32>
    %245 = arith.addf %242, %244 : vector<1x128xf32>
    %246 = arith.negf %245 : vector<1x128xf32>
    %247 = math.exp %246 : vector<1x128xf32>
    %cst_61 = arith.constant 1.000000e+00 : f32
    %248 = vector.broadcast %cst_61 : f32 to vector<1x128xf32>
    %249 = arith.addf %248, %247 : vector<1x128xf32>
    %250 = arith.divf %248, %249 : vector<1x128xf32>
    %251 = vector.extract_strided_slice %245 {offsets = [0, 64], sizes = [1, 32], strides = [1, 1]} : vector<1x128xf32> to vector<1x32xf32>
    %252 = math.tanh %251 : vector<1x32xf32>
    %253 = vector.extract_strided_slice %250 {offsets = [0, 0], sizes = [1, 32], strides = [1, 1]} : vector<1x128xf32> to vector<1x32xf32>
    %254 = vector.extract_strided_slice %250 {offsets = [0, 32], sizes = [1, 32], strides = [1, 1]} : vector<1x128xf32> to vector<1x32xf32>
    %255 = vector.extract_strided_slice %250 {offsets = [0, 96], sizes = [1, 32], strides = [1, 1]} : vector<1x128xf32> to vector<1x32xf32>
    %256 = arith.mulf %254, %238 : vector<1x32xf32>
    %257 = arith.mulf %253, %252 : vector<1x32xf32>
    %258 = arith.addf %256, %257 : vector<1x32xf32>
    %259 = math.tanh %258 : vector<1x32xf32>
    %260 = arith.mulf %255, %259 : vector<1x32xf32>
    %c3_62 = arith.constant 3 : index
    %c0_63 = arith.constant 0 : index
    %261 = vector.load %arg10[%c3_62, %c0_63] : memref<8x32xf32, #tpu.memory_space<vmem>>, vector<1x32xf32>
    tpu.vector_store %arg10[%c3_62, %c0_63], %260 {strides = array<i32>} : memref<8x32xf32, #tpu.memory_space<vmem>>, vector<1x32xf32>,
    %262 = vector.extract_strided_slice %177 {offsets = [4, 0], sizes = [1, 128], strides = [1, 1]} : vector<8x128xf32> to vector<1x128xf32>
    %263 = arith.truncf %260 : vector<1x32xf32> to vector<1x32xbf16>
    %cst_64 = arith.constant dense<0.000000e+00> : vector<1x128xf32>
    %264 = tpu.matmul %263, %181, %cst_64 {dimension_numbers = #tpu.dot_dimension_numbers<[1], [0], [0], [1], [0, 0, 1, 1], [], []>} : vector<1x32xbf16>, vector<32x128xbf16>, vector<1x128xf32> -> vector<1x128xf32>
    %265 = arith.addf %262, %264 : vector<1x128xf32>
    %266 = arith.negf %265 : vector<1x128xf32>
    %267 = math.exp %266 : vector<1x128xf32>
    %cst_65 = arith.constant 1.000000e+00 : f32
    %268 = vector.broadcast %cst_65 : f32 to vector<1x128xf32>
    %269 = arith.addf %268, %267 : vector<1x128xf32>
    %270 = arith.divf %268, %269 : vector<1x128xf32>
    %271 = vector.extract_strided_slice %265 {offsets = [0, 64], sizes = [1, 32], strides = [1, 1]} : vector<1x128xf32> to vector<1x32xf32>
    %272 = math.tanh %271 : vector<1x32xf32>
    %273 = vector.extract_strided_slice %270 {offsets = [0, 0], sizes = [1, 32], strides = [1, 1]} : vector<1x128xf32> to vector<1x32xf32>
    %274 = vector.extract_strided_slice %270 {offsets = [0, 32], sizes = [1, 32], strides = [1, 1]} : vector<1x128xf32> to vector<1x32xf32>
    %275 = vector.extract_strided_slice %270 {offsets = [0, 96], sizes = [1, 32], strides = [1, 1]} : vector<1x128xf32> to vector<1x32xf32>
    %276 = arith.mulf %274, %258 : vector<1x32xf32>
    %277 = arith.mulf %273, %272 : vector<1x32xf32>
    %278 = arith.addf %276, %277 : vector<1x32xf32>
    %279 = math.tanh %278 : vector<1x32xf32>
    %280 = arith.mulf %275, %279 : vector<1x32xf32>
    %c4_66 = arith.constant 4 : index
    %c0_67 = arith.constant 0 : index
    %281 = vector.load %arg10[%c4_66, %c0_67] : memref<8x32xf32, #tpu.memory_space<vmem>>, vector<1x32xf32>
    tpu.vector_store %arg10[%c4_66, %c0_67], %280 {strides = array<i32>} : memref<8x32xf32, #tpu.memory_space<vmem>>, vector<1x32xf32>,
    %282 = vector.extract_strided_slice %177 {offsets = [5, 0], sizes = [1, 128], strides = [1, 1]} : vector<8x128xf32> to vector<1x128xf32>
    %283 = arith.truncf %280 : vector<1x32xf32> to vector<1x32xbf16>
    %cst_68 = arith.constant dense<0.000000e+00> : vector<1x128xf32>
    %284 = tpu.matmul %283, %181, %cst_68 {dimension_numbers = #tpu.dot_dimension_numbers<[1], [0], [0], [1], [0, 0, 1, 1], [], []>} : vector<1x32xbf16>, vector<32x128xbf16>, vector<1x128xf32> -> vector<1x128xf32>
    %285 = arith.addf %282, %284 : vector<1x128xf32>
    %286 = arith.negf %285 : vector<1x128xf32>
    %287 = math.exp %286 : vector<1x128xf32>
    %cst_69 = arith.constant 1.000000e+00 : f32
    %288 = vector.broadcast %cst_69 : f32 to vector<1x128xf32>
    %289 = arith.addf %288, %287 : vector<1x128xf32>
    %290 = arith.divf %288, %289 : vector<1x128xf32>
    %291 = vector.extract_strided_slice %285 {offsets = [0, 64], sizes = [1, 32], strides = [1, 1]} : vector<1x128xf32> to vector<1x32xf32>
    %292 = math.tanh %291 : vector<1x32xf32>
    %293 = vector.extract_strided_slice %290 {offsets = [0, 0], sizes = [1, 32], strides = [1, 1]} : vector<1x128xf32> to vector<1x32xf32>
    %294 = vector.extract_strided_slice %290 {offsets = [0, 32], sizes = [1, 32], strides = [1, 1]} : vector<1x128xf32> to vector<1x32xf32>
    %295 = vector.extract_strided_slice %290 {offsets = [0, 96], sizes = [1, 32], strides = [1, 1]} : vector<1x128xf32> to vector<1x32xf32>
    %296 = arith.mulf %294, %278 : vector<1x32xf32>
    %297 = arith.mulf %293, %292 : vector<1x32xf32>
    %298 = arith.addf %296, %297 : vector<1x32xf32>
    %299 = math.tanh %298 : vector<1x32xf32>
    %300 = arith.mulf %295, %299 : vector<1x32xf32>
    %c5_70 = arith.constant 5 : index
    %c0_71 = arith.constant 0 : index
    %301 = vector.load %arg10[%c5_70, %c0_71] : memref<8x32xf32, #tpu.memory_space<vmem>>, vector<1x32xf32>
    tpu.vector_store %arg10[%c5_70, %c0_71], %300 {strides = array<i32>} : memref<8x32xf32, #tpu.memory_space<vmem>>, vector<1x32xf32>,
    %302 = vector.extract_strided_slice %177 {offsets = [6, 0], sizes = [1, 128], strides = [1, 1]} : vector<8x128xf32> to vector<1x128xf32>
    %303 = arith.truncf %300 : vector<1x32xf32> to vector<1x32xbf16>
    %cst_72 = arith.constant dense<0.000000e+00> : vector<1x128xf32>
    %304 = tpu.matmul %303, %181, %cst_72 {dimension_numbers = #tpu.dot_dimension_numbers<[1], [0], [0], [1], [0, 0, 1, 1], [], []>} : vector<1x32xbf16>, vector<32x128xbf16>, vector<1x128xf32> -> vector<1x128xf32>
    %305 = arith.addf %302, %304 : vector<1x128xf32>
    %306 = arith.negf %305 : vector<1x128xf32>
    %307 = math.exp %306 : vector<1x128xf32>
    %cst_73 = arith.constant 1.000000e+00 : f32
    %308 = vector.broadcast %cst_73 : f32 to vector<1x128xf32>
    %309 = arith.addf %308, %307 : vector<1x128xf32>
    %310 = arith.divf %308, %309 : vector<1x128xf32>
    %311 = vector.extract_strided_slice %305 {offsets = [0, 64], sizes = [1, 32], strides = [1, 1]} : vector<1x128xf32> to vector<1x32xf32>
    %312 = math.tanh %311 : vector<1x32xf32>
    %313 = vector.extract_strided_slice %310 {offsets = [0, 0], sizes = [1, 32], strides = [1, 1]} : vector<1x128xf32> to vector<1x32xf32>
    %314 = vector.extract_strided_slice %310 {offsets = [0, 32], sizes = [1, 32], strides = [1, 1]} : vector<1x128xf32> to vector<1x32xf32>
    %315 = vector.extract_strided_slice %310 {offsets = [0, 96], sizes = [1, 32], strides = [1, 1]} : vector<1x128xf32> to vector<1x32xf32>
    %316 = arith.mulf %314, %298 : vector<1x32xf32>
    %317 = arith.mulf %313, %312 : vector<1x32xf32>
    %318 = arith.addf %316, %317 : vector<1x32xf32>
    %319 = math.tanh %318 : vector<1x32xf32>
    %320 = arith.mulf %315, %319 : vector<1x32xf32>
    %c6_74 = arith.constant 6 : index
    %c0_75 = arith.constant 0 : index
    %321 = vector.load %arg10[%c6_74, %c0_75] : memref<8x32xf32, #tpu.memory_space<vmem>>, vector<1x32xf32>
    tpu.vector_store %arg10[%c6_74, %c0_75], %320 {strides = array<i32>} : memref<8x32xf32, #tpu.memory_space<vmem>>, vector<1x32xf32>,
    %322 = vector.extract_strided_slice %177 {offsets = [7, 0], sizes = [1, 128], strides = [1, 1]} : vector<8x128xf32> to vector<1x128xf32>
    %323 = arith.truncf %320 : vector<1x32xf32> to vector<1x32xbf16>
    %cst_76 = arith.constant dense<0.000000e+00> : vector<1x128xf32>
    %324 = tpu.matmul %323, %181, %cst_76 {dimension_numbers = #tpu.dot_dimension_numbers<[1], [0], [0], [1], [0, 0, 1, 1], [], []>} : vector<1x32xbf16>, vector<32x128xbf16>, vector<1x128xf32> -> vector<1x128xf32>
    %325 = arith.addf %322, %324 : vector<1x128xf32>
    %326 = arith.negf %325 : vector<1x128xf32>
    %327 = math.exp %326 : vector<1x128xf32>
    %cst_77 = arith.constant 1.000000e+00 : f32
    %328 = vector.broadcast %cst_77 : f32 to vector<1x128xf32>
    %329 = arith.addf %328, %327 : vector<1x128xf32>
    %330 = arith.divf %328, %329 : vector<1x128xf32>
    %331 = vector.extract_strided_slice %325 {offsets = [0, 64], sizes = [1, 32], strides = [1, 1]} : vector<1x128xf32> to vector<1x32xf32>
    %332 = math.tanh %331 : vector<1x32xf32>
    %333 = vector.extract_strided_slice %330 {offsets = [0, 0], sizes = [1, 32], strides = [1, 1]} : vector<1x128xf32> to vector<1x32xf32>
    %334 = vector.extract_strided_slice %330 {offsets = [0, 32], sizes = [1, 32], strides = [1, 1]} : vector<1x128xf32> to vector<1x32xf32>
    %335 = vector.extract_strided_slice %330 {offsets = [0, 96], sizes = [1, 32], strides = [1, 1]} : vector<1x128xf32> to vector<1x32xf32>
    %336 = arith.mulf %334, %318 : vector<1x32xf32>
    %337 = arith.mulf %333, %332 : vector<1x32xf32>
    %338 = arith.addf %336, %337 : vector<1x32xf32>
    %339 = math.tanh %338 : vector<1x32xf32>
    %340 = arith.mulf %335, %339 : vector<1x32xf32>
    %c7_78 = arith.constant 7 : index
    %c0_79 = arith.constant 0 : index
    %341 = vector.load %arg10[%c7_78, %c0_79] : memref<8x32xf32, #tpu.memory_space<vmem>>, vector<1x32xf32>
    tpu.vector_store %arg10[%c7_78, %c0_79], %340 {strides = array<i32>} : memref<8x32xf32, #tpu.memory_space<vmem>>, vector<1x32xf32>,
    %c0_80 = arith.constant 0 : index
    %c0_81 = arith.constant 0 : index
    %342 = vector.load %arg10[%c0_80, %c0_81] : memref<8x32xf32, #tpu.memory_space<vmem>>, vector<8x32xf32>
    %343 = arith.truncf %342 : vector<8x32xf32> to vector<8x32xbf16>
    %c1_82 = arith.constant 1 : index
    %c0_83 = arith.constant 0 : index
    %c0_84 = arith.constant 0 : index
    %344 = vector.load %arg3[%c1_82, %c0_83, %c0_84] : memref<2x32x128xbf16, #tpu.memory_space<vmem>>, vector<1x32x128xbf16>
    %345 = vector.shape_cast %344 : vector<1x32x128xbf16> to vector<32x128xbf16>
    %cst_85 = arith.constant dense<0.000000e+00> : vector<8x128xf32>
    %346 = tpu.matmul %343, %345, %cst_85 {dimension_numbers = #tpu.dot_dimension_numbers<[1], [0], [0], [1], [0, 0, 1, 1], [], []>} : vector<8x32xbf16>, vector<32x128xbf16>, vector<8x128xf32> -> vector<8x128xf32>
    %c2_86 = arith.constant 2 : index
    %c0_87 = arith.constant 0 : index
    %347 = vector.load %arg5[%c2_86, %c0_87] : memref<3x128xf32, #tpu.memory_space<vmem>>, vector<1x128xf32>
    %348 = vector.broadcast %347 : vector<1x128xf32> to vector<8x128xf32>
    %349 = arith.addf %346, %348 : vector<8x128xf32>
    %cst_88 = arith.constant 0.000000e+00 : f32
    %350 = vector.broadcast %cst_88 : f32 to vector<1x32xf32>
    %cst_89 = arith.constant 0.000000e+00 : f32
    %351 = vector.broadcast %cst_89 : f32 to vector<1x32xf32>
    %c2_90 = arith.constant 2 : index
    %c0_91 = arith.constant 0 : index
    %c0_92 = arith.constant 0 : index
    %352 = vector.load %arg4[%c2_90, %c0_91, %c0_92] : memref<3x32x128xbf16, #tpu.memory_space<vmem>>, vector<1x32x128xbf16>
    %353 = vector.shape_cast %352 : vector<1x32x128xbf16> to vector<32x128xbf16>
    %354 = vector.extract_strided_slice %349 {offsets = [0, 0], sizes = [1, 128], strides = [1, 1]} : vector<8x128xf32> to vector<1x128xf32>
    %355 = arith.truncf %350 : vector<1x32xf32> to vector<1x32xbf16>
    %cst_93 = arith.constant dense<0.000000e+00> : vector<1x128xf32>
    %356 = tpu.matmul %355, %353, %cst_93 {dimension_numbers = #tpu.dot_dimension_numbers<[1], [0], [0], [1], [0, 0, 1, 1], [], []>} : vector<1x32xbf16>, vector<32x128xbf16>, vector<1x128xf32> -> vector<1x128xf32>
    %357 = arith.addf %354, %356 : vector<1x128xf32>
    %358 = arith.negf %357 : vector<1x128xf32>
    %359 = math.exp %358 : vector<1x128xf32>
    %cst_94 = arith.constant 1.000000e+00 : f32
    %360 = vector.broadcast %cst_94 : f32 to vector<1x128xf32>
    %361 = arith.addf %360, %359 : vector<1x128xf32>
    %362 = arith.divf %360, %361 : vector<1x128xf32>
    %363 = vector.extract_strided_slice %357 {offsets = [0, 64], sizes = [1, 32], strides = [1, 1]} : vector<1x128xf32> to vector<1x32xf32>
    %364 = math.tanh %363 : vector<1x32xf32>
    %365 = vector.extract_strided_slice %362 {offsets = [0, 0], sizes = [1, 32], strides = [1, 1]} : vector<1x128xf32> to vector<1x32xf32>
    %366 = vector.extract_strided_slice %362 {offsets = [0, 32], sizes = [1, 32], strides = [1, 1]} : vector<1x128xf32> to vector<1x32xf32>
    %367 = vector.extract_strided_slice %362 {offsets = [0, 96], sizes = [1, 32], strides = [1, 1]} : vector<1x128xf32> to vector<1x32xf32>
    %368 = arith.mulf %366, %351 : vector<1x32xf32>
    %369 = arith.mulf %365, %364 : vector<1x32xf32>
    %370 = arith.addf %368, %369 : vector<1x32xf32>
    %371 = math.tanh %370 : vector<1x32xf32>
    %372 = arith.mulf %367, %371 : vector<1x32xf32>
    %373 = vector.extract_strided_slice %349 {offsets = [1, 0], sizes = [1, 128], strides = [1, 1]} : vector<8x128xf32> to vector<1x128xf32>
    %374 = arith.truncf %372 : vector<1x32xf32> to vector<1x32xbf16>
    %cst_95 = arith.constant dense<0.000000e+00> : vector<1x128xf32>
    %375 = tpu.matmul %374, %353, %cst_95 {dimension_numbers = #tpu.dot_dimension_numbers<[1], [0], [0], [1], [0, 0, 1, 1], [], []>} : vector<1x32xbf16>, vector<32x128xbf16>, vector<1x128xf32> -> vector<1x128xf32>
    %376 = arith.addf %373, %375 : vector<1x128xf32>
    %377 = arith.negf %376 : vector<1x128xf32>
    %378 = math.exp %377 : vector<1x128xf32>
    %cst_96 = arith.constant 1.000000e+00 : f32
    %379 = vector.broadcast %cst_96 : f32 to vector<1x128xf32>
    %380 = arith.addf %379, %378 : vector<1x128xf32>
    %381 = arith.divf %379, %380 : vector<1x128xf32>
    %382 = vector.extract_strided_slice %376 {offsets = [0, 64], sizes = [1, 32], strides = [1, 1]} : vector<1x128xf32> to vector<1x32xf32>
    %383 = math.tanh %382 : vector<1x32xf32>
    %384 = vector.extract_strided_slice %381 {offsets = [0, 0], sizes = [1, 32], strides = [1, 1]} : vector<1x128xf32> to vector<1x32xf32>
    %385 = vector.extract_strided_slice %381 {offsets = [0, 32], sizes = [1, 32], strides = [1, 1]} : vector<1x128xf32> to vector<1x32xf32>
    %386 = vector.extract_strided_slice %381 {offsets = [0, 96], sizes = [1, 32], strides = [1, 1]} : vector<1x128xf32> to vector<1x32xf32>
    %387 = arith.mulf %385, %370 : vector<1x32xf32>
    %388 = arith.mulf %384, %383 : vector<1x32xf32>
    %389 = arith.addf %387, %388 : vector<1x32xf32>
    %390 = math.tanh %389 : vector<1x32xf32>
    %391 = arith.mulf %386, %390 : vector<1x32xf32>
    %392 = vector.extract_strided_slice %349 {offsets = [2, 0], sizes = [1, 128], strides = [1, 1]} : vector<8x128xf32> to vector<1x128xf32>
    %393 = arith.truncf %391 : vector<1x32xf32> to vector<1x32xbf16>
    %cst_97 = arith.constant dense<0.000000e+00> : vector<1x128xf32>
    %394 = tpu.matmul %393, %353, %cst_97 {dimension_numbers = #tpu.dot_dimension_numbers<[1], [0], [0], [1], [0, 0, 1, 1], [], []>} : vector<1x32xbf16>, vector<32x128xbf16>, vector<1x128xf32> -> vector<1x128xf32>
    %395 = arith.addf %392, %394 : vector<1x128xf32>
    %396 = arith.negf %395 : vector<1x128xf32>
    %397 = math.exp %396 : vector<1x128xf32>
    %cst_98 = arith.constant 1.000000e+00 : f32
    %398 = vector.broadcast %cst_98 : f32 to vector<1x128xf32>
    %399 = arith.addf %398, %397 : vector<1x128xf32>
    %400 = arith.divf %398, %399 : vector<1x128xf32>
    %401 = vector.extract_strided_slice %395 {offsets = [0, 64], sizes = [1, 32], strides = [1, 1]} : vector<1x128xf32> to vector<1x32xf32>
    %402 = math.tanh %401 : vector<1x32xf32>
    %403 = vector.extract_strided_slice %400 {offsets = [0, 0], sizes = [1, 32], strides = [1, 1]} : vector<1x128xf32> to vector<1x32xf32>
    %404 = vector.extract_strided_slice %400 {offsets = [0, 32], sizes = [1, 32], strides = [1, 1]} : vector<1x128xf32> to vector<1x32xf32>
    %405 = vector.extract_strided_slice %400 {offsets = [0, 96], sizes = [1, 32], strides = [1, 1]} : vector<1x128xf32> to vector<1x32xf32>
    %406 = arith.mulf %404, %389 : vector<1x32xf32>
    %407 = arith.mulf %403, %402 : vector<1x32xf32>
    %408 = arith.addf %406, %407 : vector<1x32xf32>
    %409 = math.tanh %408 : vector<1x32xf32>
    %410 = arith.mulf %405, %409 : vector<1x32xf32>
    %411 = vector.extract_strided_slice %349 {offsets = [3, 0], sizes = [1, 128], strides = [1, 1]} : vector<8x128xf32> to vector<1x128xf32>
    %412 = arith.truncf %410 : vector<1x32xf32> to vector<1x32xbf16>
    %cst_99 = arith.constant dense<0.000000e+00> : vector<1x128xf32>
    %413 = tpu.matmul %412, %353, %cst_99 {dimension_numbers = #tpu.dot_dimension_numbers<[1], [0], [0], [1], [0, 0, 1, 1], [], []>} : vector<1x32xbf16>, vector<32x128xbf16>, vector<1x128xf32> -> vector<1x128xf32>
    %414 = arith.addf %411, %413 : vector<1x128xf32>
    %415 = arith.negf %414 : vector<1x128xf32>
    %416 = math.exp %415 : vector<1x128xf32>
    %cst_100 = arith.constant 1.000000e+00 : f32
    %417 = vector.broadcast %cst_100 : f32 to vector<1x128xf32>
    %418 = arith.addf %417, %416 : vector<1x128xf32>
    %419 = arith.divf %417, %418 : vector<1x128xf32>
    %420 = vector.extract_strided_slice %414 {offsets = [0, 64], sizes = [1, 32], strides = [1, 1]} : vector<1x128xf32> to vector<1x32xf32>
    %421 = math.tanh %420 : vector<1x32xf32>
    %422 = vector.extract_strided_slice %419 {offsets = [0, 0], sizes = [1, 32], strides = [1, 1]} : vector<1x128xf32> to vector<1x32xf32>
    %423 = vector.extract_strided_slice %419 {offsets = [0, 32], sizes = [1, 32], strides = [1, 1]} : vector<1x128xf32> to vector<1x32xf32>
    %424 = vector.extract_strided_slice %419 {offsets = [0, 96], sizes = [1, 32], strides = [1, 1]} : vector<1x128xf32> to vector<1x32xf32>
    %425 = arith.mulf %423, %408 : vector<1x32xf32>
    %426 = arith.mulf %422, %421 : vector<1x32xf32>
    %427 = arith.addf %425, %426 : vector<1x32xf32>
    %428 = math.tanh %427 : vector<1x32xf32>
    %429 = arith.mulf %424, %428 : vector<1x32xf32>
    %430 = vector.extract_strided_slice %349 {offsets = [4, 0], sizes = [1, 128], strides = [1, 1]} : vector<8x128xf32> to vector<1x128xf32>
    %431 = arith.truncf %429 : vector<1x32xf32> to vector<1x32xbf16>
    %cst_101 = arith.constant dense<0.000000e+00> : vector<1x128xf32>
    %432 = tpu.matmul %431, %353, %cst_101 {dimension_numbers = #tpu.dot_dimension_numbers<[1], [0], [0], [1], [0, 0, 1, 1], [], []>} : vector<1x32xbf16>, vector<32x128xbf16>, vector<1x128xf32> -> vector<1x128xf32>
    %433 = arith.addf %430, %432 : vector<1x128xf32>
    %434 = arith.negf %433 : vector<1x128xf32>
    %435 = math.exp %434 : vector<1x128xf32>
    %cst_102 = arith.constant 1.000000e+00 : f32
    %436 = vector.broadcast %cst_102 : f32 to vector<1x128xf32>
    %437 = arith.addf %436, %435 : vector<1x128xf32>
    %438 = arith.divf %436, %437 : vector<1x128xf32>
    %439 = vector.extract_strided_slice %433 {offsets = [0, 64], sizes = [1, 32], strides = [1, 1]} : vector<1x128xf32> to vector<1x32xf32>
    %440 = math.tanh %439 : vector<1x32xf32>
    %441 = vector.extract_strided_slice %438 {offsets = [0, 0], sizes = [1, 32], strides = [1, 1]} : vector<1x128xf32> to vector<1x32xf32>
    %442 = vector.extract_strided_slice %438 {offsets = [0, 32], sizes = [1, 32], strides = [1, 1]} : vector<1x128xf32> to vector<1x32xf32>
    %443 = vector.extract_strided_slice %438 {offsets = [0, 96], sizes = [1, 32], strides = [1, 1]} : vector<1x128xf32> to vector<1x32xf32>
    %444 = arith.mulf %442, %427 : vector<1x32xf32>
    %445 = arith.mulf %441, %440 : vector<1x32xf32>
    %446 = arith.addf %444, %445 : vector<1x32xf32>
    %447 = math.tanh %446 : vector<1x32xf32>
    %448 = arith.mulf %443, %447 : vector<1x32xf32>
    %449 = vector.extract_strided_slice %349 {offsets = [5, 0], sizes = [1, 128], strides = [1, 1]} : vector<8x128xf32> to vector<1x128xf32>
    %450 = arith.truncf %448 : vector<1x32xf32> to vector<1x32xbf16>
    %cst_103 = arith.constant dense<0.000000e+00> : vector<1x128xf32>
    %451 = tpu.matmul %450, %353, %cst_103 {dimension_numbers = #tpu.dot_dimension_numbers<[1], [0], [0], [1], [0, 0, 1, 1], [], []>} : vector<1x32xbf16>, vector<32x128xbf16>, vector<1x128xf32> -> vector<1x128xf32>
    %452 = arith.addf %449, %451 : vector<1x128xf32>
    %453 = arith.negf %452 : vector<1x128xf32>
    %454 = math.exp %453 : vector<1x128xf32>
    %cst_104 = arith.constant 1.000000e+00 : f32
    %455 = vector.broadcast %cst_104 : f32 to vector<1x128xf32>
    %456 = arith.addf %455, %454 : vector<1x128xf32>
    %457 = arith.divf %455, %456 : vector<1x128xf32>
    %458 = vector.extract_strided_slice %452 {offsets = [0, 64], sizes = [1, 32], strides = [1, 1]} : vector<1x128xf32> to vector<1x32xf32>
    %459 = math.tanh %458 : vector<1x32xf32>
    %460 = vector.extract_strided_slice %457 {offsets = [0, 0], sizes = [1, 32], strides = [1, 1]} : vector<1x128xf32> to vector<1x32xf32>
    %461 = vector.extract_strided_slice %457 {offsets = [0, 32], sizes = [1, 32], strides = [1, 1]} : vector<1x128xf32> to vector<1x32xf32>
    %462 = vector.extract_strided_slice %457 {offsets = [0, 96], sizes = [1, 32], strides = [1, 1]} : vector<1x128xf32> to vector<1x32xf32>
    %463 = arith.mulf %461, %446 : vector<1x32xf32>
    %464 = arith.mulf %460, %459 : vector<1x32xf32>
    %465 = arith.addf %463, %464 : vector<1x32xf32>
    %466 = math.tanh %465 : vector<1x32xf32>
    %467 = arith.mulf %462, %466 : vector<1x32xf32>
    %468 = vector.extract_strided_slice %349 {offsets = [6, 0], sizes = [1, 128], strides = [1, 1]} : vector<8x128xf32> to vector<1x128xf32>
    %469 = arith.truncf %467 : vector<1x32xf32> to vector<1x32xbf16>
    %cst_105 = arith.constant dense<0.000000e+00> : vector<1x128xf32>
    %470 = tpu.matmul %469, %353, %cst_105 {dimension_numbers = #tpu.dot_dimension_numbers<[1], [0], [0], [1], [0, 0, 1, 1], [], []>} : vector<1x32xbf16>, vector<32x128xbf16>, vector<1x128xf32> -> vector<1x128xf32>
    %471 = arith.addf %468, %470 : vector<1x128xf32>
    %472 = arith.negf %471 : vector<1x128xf32>
    %473 = math.exp %472 : vector<1x128xf32>
    %cst_106 = arith.constant 1.000000e+00 : f32
    %474 = vector.broadcast %cst_106 : f32 to vector<1x128xf32>
    %475 = arith.addf %474, %473 : vector<1x128xf32>
    %476 = arith.divf %474, %475 : vector<1x128xf32>
    %477 = vector.extract_strided_slice %471 {offsets = [0, 64], sizes = [1, 32], strides = [1, 1]} : vector<1x128xf32> to vector<1x32xf32>
    %478 = math.tanh %477 : vector<1x32xf32>
    %479 = vector.extract_strided_slice %476 {offsets = [0, 0], sizes = [1, 32], strides = [1, 1]} : vector<1x128xf32> to vector<1x32xf32>
    %480 = vector.extract_strided_slice %476 {offsets = [0, 32], sizes = [1, 32], strides = [1, 1]} : vector<1x128xf32> to vector<1x32xf32>
    %481 = vector.extract_strided_slice %476 {offsets = [0, 96], sizes = [1, 32], strides = [1, 1]} : vector<1x128xf32> to vector<1x32xf32>
    %482 = arith.mulf %480, %465 : vector<1x32xf32>
    %483 = arith.mulf %479, %478 : vector<1x32xf32>
    %484 = arith.addf %482, %483 : vector<1x32xf32>
    %485 = math.tanh %484 : vector<1x32xf32>
    %486 = arith.mulf %481, %485 : vector<1x32xf32>
    %487 = vector.extract_strided_slice %349 {offsets = [7, 0], sizes = [1, 128], strides = [1, 1]} : vector<8x128xf32> to vector<1x128xf32>
    %488 = arith.truncf %486 : vector<1x32xf32> to vector<1x32xbf16>
    %cst_107 = arith.constant dense<0.000000e+00> : vector<1x128xf32>
    %489 = tpu.matmul %488, %353, %cst_107 {dimension_numbers = #tpu.dot_dimension_numbers<[1], [0], [0], [1], [0, 0, 1, 1], [], []>} : vector<1x32xbf16>, vector<32x128xbf16>, vector<1x128xf32> -> vector<1x128xf32>
    %490 = arith.addf %487, %489 : vector<1x128xf32>
    %491 = arith.negf %490 : vector<1x128xf32>
    %492 = math.exp %491 : vector<1x128xf32>
    %cst_108 = arith.constant 1.000000e+00 : f32
    %493 = vector.broadcast %cst_108 : f32 to vector<1x128xf32>
    %494 = arith.addf %493, %492 : vector<1x128xf32>
    %495 = arith.divf %493, %494 : vector<1x128xf32>
    %496 = vector.extract_strided_slice %490 {offsets = [0, 64], sizes = [1, 32], strides = [1, 1]} : vector<1x128xf32> to vector<1x32xf32>
    %497 = math.tanh %496 : vector<1x32xf32>
    %498 = vector.extract_strided_slice %495 {offsets = [0, 0], sizes = [1, 32], strides = [1, 1]} : vector<1x128xf32> to vector<1x32xf32>
    %499 = vector.extract_strided_slice %495 {offsets = [0, 32], sizes = [1, 32], strides = [1, 1]} : vector<1x128xf32> to vector<1x32xf32>
    %500 = vector.extract_strided_slice %495 {offsets = [0, 96], sizes = [1, 32], strides = [1, 1]} : vector<1x128xf32> to vector<1x32xf32>
    %501 = arith.mulf %499, %484 : vector<1x32xf32>
    %502 = arith.mulf %498, %497 : vector<1x32xf32>
    %503 = arith.addf %501, %502 : vector<1x32xf32>
    %504 = math.tanh %503 : vector<1x32xf32>
    %505 = arith.mulf %500, %504 : vector<1x32xf32>
    %506 = arith.truncf %505 : vector<1x32xf32> to vector<1x32xbf16>
    %c0_109 = arith.constant 0 : index
    %c0_110 = arith.constant 0 : index
    %507 = vector.load %arg6[%c0_109, %c0_110] : memref<32x128xbf16, #tpu.memory_space<vmem>>, vector<32x128xbf16>
    %cst_111 = arith.constant dense<0.000000e+00> : vector<1x128xf32>
    %508 = tpu.matmul %506, %507, %cst_111 {dimension_numbers = #tpu.dot_dimension_numbers<[1], [0], [0], [1], [0, 0, 1, 1], [], []>} : vector<1x32xbf16>, vector<32x128xbf16>, vector<1x128xf32> -> vector<1x128xf32>
    %c0_112 = arith.constant 0 : index
    %c0_113 = arith.constant 0 : index
    %509 = vector.load %arg7[%c0_112, %c0_113] : memref<1x128xf32, #tpu.memory_space<vmem>>, vector<1x128xf32>
    %510 = arith.addf %508, %509 : vector<1x128xf32>
    %511 = vector.extract_strided_slice %510 {offsets = [0, 0], sizes = [1, 1], strides = [1, 1]} : vector<1x128xf32> to vector<1x1xf32>
    %512 = vector.extract_strided_slice %510 {offsets = [0, 1], sizes = [1, 1], strides = [1, 1]} : vector<1x128xf32> to vector<1x1xf32>
    %cst_114 = arith.constant -3.000000e+00 : f32
    %cst_115 = arith.constant 3.000000e+00 : f32
    %513 = vector.broadcast %cst_114 : f32 to vector<1x1xf32>
    %514 = arith.maximumf %513, %512 : vector<1x1xf32>
    %515 = vector.broadcast %cst_115 : f32 to vector<1x1xf32>
    %516 = arith.minimumf %515, %514 : vector<1x1xf32>
    %c0_116 = arith.constant 0 : index
    %c0_117 = arith.constant 0 : index
    %517 = vector.load %arg1[%c0_116, %c0_117] : memref<1x8xf32, #tpu.memory_space<vmem>>, vector<1x8xf32>
    %518 = vector.broadcast %511 : vector<1x1xf32> to vector<1x8xf32>
    %519 = arith.subf %517, %518 : vector<1x8xf32>
    %cst_118 = arith.constant 0.000000e+00 : f32
    %520 = vector.broadcast %cst_118 : f32 to vector<1x1xf32>
    %521 = arith.subf %520, %516 : vector<1x1xf32>
    %522 = math.exp %521 : vector<1x1xf32>
    %523 = vector.broadcast %522 : vector<1x1xf32> to vector<1x8xf32>
    %524 = arith.mulf %519, %523 : vector<1x8xf32>
    %c0_119 = arith.constant 0 : index
    %c0_120 = arith.constant 0 : index
    %525 = vector.load %arg8[%c0_119, %c0_120] : memref<1x8xf32, #tpu.memory_space<vmem>>, vector<1x8xf32>
    tpu.vector_store %arg8[%c0_119, %c0_120], %524 {strides = array<i32>} : memref<1x8xf32, #tpu.memory_space<vmem>>, vector<1x8xf32>,
    %cst_121 = arith.constant dense<0.000000e+00> : vector<1xf32>
    %526 = vector.multi_reduction <add>, %516, %cst_121 [1] : vector<1x1xf32> to vector<1xf32>
    %527 = vector.shape_cast %526 : vector<1xf32> to vector<1x1xf32>
    %cst_122 = arith.constant 0.000000e+00 : f32
    %528 = vector.broadcast %cst_122 : f32 to vector<1x1xf32>
    %529 = arith.subf %528, %527 : vector<1x1xf32>
    %c0_123 = arith.constant 0 : index
    %c0_124 = arith.constant 0 : index
    %530 = vector.load %arg9[%c0_123, %c0_124] : memref<1x1xf32, #tpu.memory_space<vmem>>, vector<1x1xf32>
    tpu.vector_store %arg9[%c0_123, %c0_124], %529 {strides = array<i32>} : memref<1x1xf32, #tpu.memory_space<vmem>>, vector<1x1xf32>,
    return
  }
}

</mosaic_0001>

<bundles_post_ra>
// kernel: lstm_flow_forward.1
= control target key start
LH: loop header
LB: loop body
LE: loop exit
PB: predicated region body
PF: predicated region fallthrough
CT: control target
= control target key end

     0   :  { %15 = vsyncpa [#allocation4], 0  ;;  %s3748_s0 = inlined_call_operand.vmem [shape: bf16[8,16], index: 0, kind: input, shape index: {}]   ;;  %s3749_s1 = inlined_call_operand.hbm [shape: f32[1,8], index: 1, kind: input, shape index: {}]   ;;  %s3750_s2 = inlined_call_operand.hbm [shape: bf16[16,128], index: 2, kind: input, shape index: {}]   ;;  %s3751_s3 = inlined_call_operand.hbm [shape: bf16[2,32,128], index: 3, kind: input, shape index: {}]   ;;  %s3752_s4 = inlined_call_operand.vmem [shape: bf16[3,32,128], index: 4, kind: input, shape index: {}]   ;;  %s3753_s5 = inlined_call_operand.hbm [shape: f32[3,128], index: 5, kind: input, shape index: {}]   ;;  %s3754_s6 = inlined_call_operand.hbm [shape: bf16[32,128], index: 6, kind: input, shape index: {}]   ;;  %s3755_s7 = inlined_call_operand.hbm [shape: f32[1,128], index: 7, kind: input, shape index: {}]   ;;  %s3756_s8 = inlined_call_operand.hbm [shape: f32[1,8], index: 8, kind: output, shape index: {0}]   ;;  %s3757_s9 = inlined_call_operand.hbm [shape: f32[1,1], index: 9, kind: output, shape index: {1}]  }
   0x1   :  { %16 = vsyncpa [#allocation7], 0 }
   0x2   :  { %17 = vsyncpa [#allocation10], 0 }
   0x3   :  { %18 = vsyncpa [#allocation13], 0 }
   0x4   :  { %19 = vsyncpa [#allocation5], 0 }
   0x5   :  { %20 = vsyncpa [#allocation16], 0  ;;  %s3213_s30 = smov [#allocation6]  }
   0x6   :  { %s38_s10 = sshll.u32 %s3213_s30, 4  ;;  %s39_s10 = int_to_ptr.vmem [resolvable:$true] %s38_s10 }
   0x7   :  { %s3049_s11 = scalar_lea.vmem %s39_s10, 128  ;;  %p3054_p1 = scmp.lt.s32.totalorder %s39_s10, %s39_s10 }
   0x8   :  { %p3050_p0 = scmp.ne.s32.totalorder %s39_s10, %s3049_s11  ;;  %p3055_p2 = scmp.lt.s32.totalorder %s3049_s11, %s3049_s11 }
   0xa   :  { %p3056_p3 = por %p3055_p2, %p3054_p1 }
   0xc   :  { %p3057_p4 = pnand %p3056_p3, %p3050_p0 }
   0xe   :  { %3060 = shalt.err (!%p3057_p4)
}
   0xf   :  { %s3214_s12 = smov 64   ;;  %s3215_s13 = smov 4  }
  0x10   :  { %44 = dma.hbm_to_vmem [thread:$0]  %s3750_s2, 128, %s39_s10, [#allocation7], %s3214_s12, %s3214_s12, %s3215_s13  }
  0x11   :  { %s3216_s16 = smov [#allocation9]   ;;  %s3217_s18 = smov [#allocation3]  }
  0x12   :  { %s65_s17 = sshll.u32 %s3216_s16, 4  ;;  %s29_s19 = sshll.u32 %s3217_s18, 4  ;;  %s66_s17 = int_to_ptr.vmem [resolvable:$true] %s65_s17  ;;  %s30_s19 = int_to_ptr.vmem [resolvable:$true] %s29_s19 }
  0x13   :  { %s3069_s20 = scalar_lea.vmem %s66_s17, 64  ;;  %p3074_p6 = scmp.lt.s32.totalorder %s66_s17, %s66_s17 }
  0x14   :  { %p3070_p5 = scmp.ne.s32.totalorder %s66_s17, %s3069_s20  ;;  %p3075_p7 = scmp.lt.s32.totalorder %s3069_s20, %s3069_s20 }
  0x16   :  { %p3076_p8 = por %p3075_p7, %p3074_p6 }
  0x18   :  { %p3077_p9 = pnand %p3076_p8, %p3070_p5 }
  0x1a   :  { %3080 = shalt.err (!%p3077_p9)
}
  0x1b   :  { %68 = dma.hbm_to_vmem [thread:$0]  %s3753_s5, 64, %s66_s17, [#allocation10]  }
  0x1c   :  { %s3089_s23 = scalar_lea.vmem %s30_s19, 16  ;;  %s3093_s2 = scalar_lea.vmem %s30_s19, 32 }
  0x1d   :  { %p3090_p10 = scmp.ne.s32.totalorder %s30_s19, %s3089_s23  ;;  %p3094_p11 = scmp.lt.s32.totalorder %s30_s19, %s30_s19 }
  0x1e   :  { %p3095_p12 = scmp.lt.s32.totalorder %s3093_s2, %s3089_s23 }
  0x20   :  { %p3096_p13 = por %p3095_p12, %p3094_p11 }
  0x22   :  { %p3097_p0 = pnand %p3096_p13, %p3090_p10 }
  0x24   :  { %3100 = shalt.err (!%p3097_p0)
}
  0x25   :  { %32 = dma.hbm_to_vmem [thread:$0]  %s3749_s1, 16, %s30_s19, [#allocation4]  }
  0x26   :  { %s3218_s26 = smov [#allocation8]   ;;  %s3219_s28 = smov [#allocation11]  }
  0x27   :  { %s50_s27 = sshll.u32 %s3218_s26, 4  ;;  %s74_s29 = sshll.u32 %s3219_s28, 4  ;;  %s51_s27 = int_to_ptr.vmem [resolvable:$true] %s50_s27  ;;  %s75_s29 = int_to_ptr.vmem [resolvable:$true] %s74_s29 }
  0x28   :  { %s3109_s30 = scalar_lea.vmem %s51_s27, 512  ;;  %p3114_p2 = scmp.lt.s32.totalorder %s51_s27, %s51_s27 }
  0x29   :  { %p3110_p1 = scmp.ne.s32.totalorder %s51_s27, %s3109_s30  ;;  %p3115_p3 = scmp.lt.s32.totalorder %s3109_s30, %s3109_s30 }
  0x2b   :  { %p3116_p4 = por %p3115_p3, %p3114_p2 }
  0x2d   :  { %p3117_p5 = pnand %p3116_p4, %p3110_p1 }
  0x2f   :  { %3120 = shalt.err (!%p3117_p5)
}
  0x30   :  { %56 = dma.hbm_to_vmem [thread:$0]  %s3751_s3, 512, %s51_s27, [#allocation7], %s3214_s12, %s3214_s12, %s3215_s13  }
  0x31   :  { %s3129_s1 = scalar_lea.vmem %s75_s29, 256  ;;  %p3134_p7 = scmp.lt.s32.totalorder %s75_s29, %s75_s29 }
  0x32   :  { %p3130_p6 = scmp.ne.s32.totalorder %s75_s29, %s3129_s1  ;;  %p3135_p8 = scmp.lt.s32.totalorder %s3129_s1, %s3129_s1 }
  0x34   :  { %p3136_p9 = por %p3135_p8, %p3134_p7 }
  0x36   :  { %p3137_p10 = pnand %p3136_p9, %p3130_p6 }
  0x38   :  { %3140 = shalt.err (!%p3137_p10)
}
  0x39   :  { %80 = dma.hbm_to_vmem [thread:$0]  %s3754_s6, 256, %s75_s29, [#allocation10], %s3214_s12, %s3214_s12, %s3215_s13  }
  0x3a   :  { %s3220_s15 = smov [#allocation12]  }
  0x3b   :  { %s87_s16 = sshll.u32 %s3220_s15, 4  ;;  %s88_s16 = int_to_ptr.vmem [resolvable:$true] %s87_s16 }
  0x3c   :  { %s3149_s17 = scalar_lea.vmem %s88_s16, 16  ;;  %s3153_s3 = scalar_lea.vmem %s88_s16, 32 }
  0x3d   :  { %p3150_p11 = scmp.ne.s32.totalorder %s88_s16, %s3149_s17  ;;  %p3154_p12 = scmp.lt.s32.totalorder %s88_s16, %s88_s16 }
  0x3e   :  { %p3155_p13 = scmp.lt.s32.totalorder %s3153_s3, %s3149_s17 }
  0x40   :  { %p3156_p0 = por %p3155_p13, %p3154_p12 }
  0x42   :  { %p3157_p1 = pnand %p3156_p0, %p3150_p11 }
  0x44   :  { %3160 = shalt.err (!%p3157_p1)
}
  0x45   :  { %90 = dma.hbm_to_vmem [thread:$0]  %s3755_s7, 16, %s88_s16, [#allocation13]  }
  0x46   :  { %3201 = dma.done.wait [#allocation4], 16  }
  0x47   :  { %3202 = vsyncadd [#allocation4], 4294967280 }
  0x48   :  { %3203 = dma.done.wait [#allocation7], 640  }
  0x49   :  { %3204 = vsyncadd [#allocation7], 4294966656 }
  0x4a   :  { %3205 = dma.done.wait [#allocation10], 320  }
  0x4b   :  { %3206 = vsyncadd [#allocation10], 4294966976 }
  0x4c   :  { %3207 = dma.done.wait [#allocation13], 16  }
  0x4d   :  { %3208 = vsyncadd [#allocation13], 4294967280  ;;  %v3221_v0 = vmov 0.0   ;;  %vm3222_vm0 = vmmov 0   ;;  %v3223_v1 = vmov 0   ;;  %v2834_v2 = vld [vmem:[#allocation6] sm:$0xff]  }
  0x4e   :  { %2593 = vmatprep.subr.bf16.mxu0 %v3221_v0  ;;  %2599 = vmatprep.subr.bf16.mxu1 %v3221_v0  ;;  %v3316_v3 = vld [vmem:[%s3752_s4 + $0x8] sm:$0xff]   ;;  %vm124_vm1 = vcmask 130048   ;;  %v110_v4 = vld [vmem:[%s3748_s0] sm:$0xf]  ;;  %v2436_v6 = vld [vmem:[#allocation9] ss:$0 sm:$0xff] }
  0x4f   :  { %2595 = vmatprep.mubr.msk.bf16.mxu0 %vm3222_vm0, %v3221_v0  ;;  %2603 = vmatprep.mubr.msk.bf16.mxu1 %vm3222_vm0, %v3221_v0  ;;  %v3325_v5 = vld [vmem:[%s3752_s4] sm:$0xff]   ;;  %s3224_s0 = smov 32   ;;  %vm184_vm2 = vcmask 261120   ;;  %vm257_vm3 = vcmask 253952   ;;  %vm427_vm4 = vcmask 256002   ;;  %vm599_vm5 = vcmask 258052  }
  0x50   :  { %2831 = vset.pattern.permute.xlu0 %v3223_v1  ;;  %2594 = vmatpush3.bf16.msra.mxu0 %v2834_v2  ;;  %vm771_vm6 = vcmask 260102   ;;  %vm341_vm7 = vcmask 254977   ;;  %vm512_vm8 = vcmask 257027   ;;  %vm684_vm9 = vcmask 259077   ;;  %s3228_s5 = smov [#allocation15]  }
  0x51   :  { %2600 = vmatpush3.bf16.msra.mxu1 %v3316_v3  ;;  %2607 = vmatprep.subr.bf16.mxu0 %v3221_v0  ;;  %vm856_vm10 = vcmask 261127   ;;  %vm2394_vm11 = vcmask 57344   ;;  %s2420_s10 = sshll.u32 %s3228_s5, 4  ;;  %vm2402_vm12 = vcmask 0   ;;  %s2421_s10 = int_to_ptr.vmem [resolvable:$true] %s2420_s10 }
  0x52   :  { %2601 = vmatprep.subr.bf16.mxu1 %v3221_v0 }
  0x53   :  { %2596 = vmatmul.mubr.msk.bf16.vlgmr.msra.gmra.mxu0 %vm124_vm1, %v110_v4 }
  0x54   :  { %2608 = vmatpush3.bf16.msra.mxu0 %v3316_v3  ;;  %2611 = vmatprep.mubr.msk.bf16.mxu0 %vm3222_vm0, %v3221_v0 }
  0x55   :  { %2602 = vmatpush3.bf16.msra.mxu1 %v3325_v5  ;;  %2609 = vmatprep.subr.bf16.mxu0 %v3221_v0 }
  0x56   :  { %2615 = vmatprep.subr.bf16.mxu1 %v3221_v0 }
  0x58   :  { %2604 = vmatmul.mubr.bf16.vlgmr.msra.gmra.mxu1 %v3223_v1  ;;  %2610 = vmatpush3.bf16.msra.mxu0 %v3325_v5 }
  0x59   :  { %2616 = vmatpush3.bf16.msra.mxu1 %v3316_v3  ;;  %2619 = vmatprep.mubr.msk.bf16.mxu1 %vm3222_vm0, %v3221_v0 }
  0x5a   :  { %2617 = vmatprep.subr.bf16.mxu1 %v3221_v0  ;;  %2623 = vmatprep.subr.bf16.mxu0 %v3221_v0 }
  0x5d   :  { %2618 = vmatpush3.bf16.msra.mxu1 %v3325_v5 }
  0x5e   :  { %2631 = vmatprep.subr.bf16.mxu1 %v3221_v0 }
 0x113   :  { %v162_v7 = vpop.f32.mrf.mxu0 }
 0x114   :  { %v3344_v8 = vadd.f32 %v2436_v6, %v162_v7 }
 0x115   :  { %v2597_v9 = vpop.f32.mrf.mxu0 }
 0x117   :  { %v165_v10 = vpop.f32.mrf.mxu0 }
 0x118   :  { %v222_v11 = vpop.f32.mrf.mxu1 }
 0x119   :  { %v228_v12 = vadd.f32 %v222_v11, %v3344_v8  ;;  %v2598_v13 = vpop.f32.mrf.mxu0 }
 0x11a   :  { %v2605_v14 = vpop.f32.mrf.mxu1 }
 0x11b   :  { %2847 = vtanh.f32 %v228_v12  ;;  %v2441_v18 = vmul.f32 -1.442695, %v228_v12 }
 0x11c   :  { %v225_v15 = vpop.f32.mrf.mxu1 }
 0x11d   :  { %2849 = vpow2.f32 %v2441_v18 }
 0x11e   :  { %v2606_v16 = vpop.f32.mrf.mxu1 }
 0x128   :  { %v2848_v17 = vpop.eup %2847 }
 0x129   :  { %238 = vrot.lane.b32.xlu0 %v2848_v17, %s3214_s12 }
 0x12a   :  { %v2850_v19 = vpop.eup %2849 }
 0x12b   :  { %v232_v20 = vadd.f32 1.0, %v2850_v19 }
 0x12d   :  { %2851 = vrcp.f32 %v232_v20 }
 0x13a   :  { %v2852_v21 = vpop.eup %2851 }
 0x13b   :  { %v236_v24 = vmul.f32 0.0, %v2852_v21 }
 0x19b   :  { %v239_v22 = vpop.permute.xlu0 %238 }
 0x19c   :  { %v241_v23 = vmul.f32 %v2852_v21, %v239_v22 }
 0x19e   :  { %243 = vrot.lane.b32.xlu0 %v241_v23, %s3224_s0 }
 0x210   :  { %v244_v25 = vpop.permute.xlu0 %243 }
 0x211   :  { %v246_v26 = vadd.f32 %v244_v25, %v236_v24 }
 0x213   :  { %2853 = vtanh.f32 %v246_v26  ;;  %v318_v45 = vrot.slane %v246_v26, 7 }
 0x220   :  { %v2854_v27 = vpop.eup %2853 }
 0x221   :  { %249 = vrot.lane.b32.xlu1 %v2854_v27, %s3214_s12 }
 0x293   :  { %v250_v28 = vpop.permute.xlu1 %249 }
 0x294   :  { %v3350_v29 = vmul.f32 %v2852_v21, %v250_v28 }
 0x296   :  { %v259_v30 = vpack.c.bf16 %v3350_v29, %v3350_v29 }
 0x298   :  { %261 = vrot.lane.b32.xlu1 %v259_v30, %s3224_s0 }
 0x30a   :  { %v262_v31 = vpop.permute.xlu1 %261 }
 0x30b   :  { %2612 = vmatmul.mubr.msk.bf16.vlgmr.msra.gmra.mxu0 %vm184_vm2, %v262_v31 }
 0x30c   :  { %2624 = vmatpush3.bf16.msra.mxu0 %v3316_v3  ;;  %2627 = vmatprep.mubr.msk.bf16.mxu0 %vm3222_vm0, %v3221_v0 }
 0x30d   :  { %2625 = vmatprep.subr.bf16.mxu0 %v3221_v0 }
 0x310   :  { %2626 = vmatpush3.bf16.msra.mxu0 %v3325_v5 }
 0x311   :  { %2639 = vmatprep.subr.bf16.mxu0 %v3221_v0 }
 0x3cb   :  { %v300_v32 = vpop.f32.mrf.mxu0 }
 0x3cc   :  { %v307_v33 = vrot.slane %v300_v32, 7 }
 0x3cd   :  { %v2613_v34 = vpop.f32.mrf.mxu0 }
 0x3ce   :  { %v309_v35 = vadd.f32 %v307_v33, %v3344_v8 }
 0x3cf   :  { %v303_v36 = vpop.f32.mrf.mxu0 }
 0x3d0   :  { %2855 = vtanh.f32 %v309_v35  ;;  %v2443_v39 = vmul.f32 -1.442695, %v309_v35 }
 0x3d1   :  { %v2614_v37 = vpop.f32.mrf.mxu0 }
 0x3d2   :  { %2857 = vpow2.f32 %v2443_v39 }
 0x3dd   :  { %v2856_v38 = vpop.eup %2855 }
 0x3de   :  { %322 = vrot.lane.b32.xlu0 %v2856_v38, %s3214_s12 }
 0x3df   :  { %v2858_v40 = vpop.eup %2857 }
 0x3e0   :  { %v313_v41 = vadd.f32 1.0, %v2858_v40 }
 0x3e2   :  { %2859 = vrcp.f32 %v313_v41 }
 0x3ef   :  { %v2860_v42 = vpop.eup %2859 }
 0x3f0   :  { %v320_v46 = vmul.f32 %v2860_v42, %v318_v45 }
 0x450   :  { %v323_v43 = vpop.permute.xlu0 %322 }
 0x451   :  { %v325_v44 = vmul.f32 %v2860_v42, %v323_v43 }
 0x453   :  { %327 = vrot.lane.b32.xlu1 %v325_v44, %s3224_s0 }
 0x4c5   :  { %v328_v47 = vpop.permute.xlu1 %327 }
 0x4c6   :  { %v330_v48 = vadd.f32 %v328_v47, %v320_v46 }
 0x4c8   :  { %2861 = vtanh.f32 %v330_v48  ;;  %v404_v9 = vrot.slane %v330_v48, 7 }
 0x4d5   :  { %v2862_v49 = vpop.eup %2861 }
 0x4d6   :  { %333 = vrot.lane.b32.xlu0 %v2862_v49, %s3214_s12 }
 0x548   :  { %v334_v50 = vpop.permute.xlu0 %333 }
 0x549   :  { %v3366_v51 = vmul.f32 %v2860_v42, %v334_v50 }
 0x54b   :  { %v343_v52 = vpack.c.bf16 %v3366_v51, %v3366_v51 }
 0x54d   :  { %v345_v53 = vshrl.u32 %v343_v52, 16 }
 0x54f   :  { %347 = vrot.lane.b32.xlu1 %v345_v53, %s3224_s0 }
 0x5c1   :  { %v348_v54 = vpop.permute.xlu1 %347 }
 0x5c2   :  { %2620 = vmatmul.mubr.msk.bf16.vlgmr.msra.gmra.mxu1 %vm184_vm2, %v348_v54 }
 0x5c3   :  { %2632 = vmatpush3.bf16.msra.mxu1 %v3316_v3  ;;  %2635 = vmatprep.mubr.msk.bf16.mxu1 %vm3222_vm0, %v3221_v0 }
 0x5c4   :  { %2633 = vmatprep.subr.bf16.mxu1 %v3221_v0 }
 0x5c7   :  { %2634 = vmatpush3.bf16.msra.mxu1 %v3325_v5 }
 0x5c8   :  { %2647 = vmatprep.subr.bf16.mxu1 %v3221_v0 }
 0x682   :  { %v386_v55 = vpop.f32.mrf.mxu1 }
 0x683   :  { %v393_v56 = vrot.slane %v386_v55, 6 }
 0x684   :  { %v2621_v57 = vpop.f32.mrf.mxu1 }
 0x685   :  { %v395_v58 = vadd.f32 %v393_v56, %v3344_v8 }
 0x686   :  { %v389_v59 = vpop.f32.mrf.mxu1 }
 0x687   :  { %2863 = vtanh.f32 %v395_v58  ;;  %v2445_v62 = vmul.f32 -1.442695, %v395_v58 }
 0x688   :  { %v2622_v60 = vpop.f32.mrf.mxu1 }
 0x689   :  { %2865 = vpow2.f32 %v2445_v62 }
 0x694   :  { %v2864_v61 = vpop.eup %2863 }
 0x695   :  { %408 = vrot.lane.b32.xlu0 %v2864_v61, %s3214_s12 }
 0x696   :  { %v2866_v63 = vpop.eup %2865 }
 0x697   :  { %v399_v2 = vadd.f32 1.0, %v2866_v63 }
 0x699   :  { %2867 = vrcp.f32 %v399_v2 }
 0x6a6   :  { %v2868_v4 = vpop.eup %2867 }
 0x6a7   :  { %v406_v10 = vmul.f32 %v2868_v4, %v404_v9 }
 0x707   :  { %v409_v6 = vpop.permute.xlu0 %408 }
 0x708   :  { %v411_v7 = vmul.f32 %v2868_v4, %v409_v6 }
 0x70a   :  { %413 = vrot.lane.b32.xlu1 %v411_v7, %s3224_s0 }
 0x77c   :  { %v414_v11 = vpop.permute.xlu1 %413 }
 0x77d   :  { %v416_v12 = vadd.f32 %v414_v11, %v406_v10 }
 0x77f   :  { %2869 = vtanh.f32 %v416_v12  ;;  %v489_v33 = vrot.slane %v416_v12, 7 }
 0x78c   :  { %v2870_v13 = vpop.eup %2869 }
 0x78d   :  { %419 = vrot.lane.b32.xlu0 %v2870_v13, %s3214_s12 }
 0x7ff   :  { %v420_v14 = vpop.permute.xlu0 %419 }
 0x800   :  { %v3382_v15 = vmul.f32 %v2868_v4, %v420_v14 }
 0x802   :  { %v429_v16 = vpack.c.bf16 %v3382_v15, %v3382_v15 }
 0x804   :  { %v431_v17 = vrot.slane %v429_v16, 1 }
 0x806   :  { %432 = vrot.lane.b32.xlu1 %v431_v17, %s3224_s0 }
 0x878   :  { %v433_v18 = vpop.permute.xlu1 %432 }
 0x879   :  { %2628 = vmatmul.mubr.msk.bf16.vlgmr.msra.gmra.mxu0 %vm184_vm2, %v433_v18 }
 0x87a   :  { %2640 = vmatpush3.bf16.msra.mxu0 %v3316_v3  ;;  %2643 = vmatprep.mubr.msk.bf16.mxu0 %vm3222_vm0, %v3221_v0 }
 0x87b   :  { %2641 = vmatprep.subr.bf16.mxu0 %v3221_v0 }
 0x87e   :  { %2642 = vmatpush3.bf16.msra.mxu0 %v3325_v5 }
 0x87f   :  { %2655 = vmatprep.subr.bf16.mxu0 %v3221_v0 }
 0x939   :  { %v471_v19 = vpop.f32.mrf.mxu0 }
 0x93a   :  { %v478_v20 = vrot.slane %v471_v19, 5 }
 0x93b   :  { %v2629_v21 = vpop.f32.mrf.mxu0 }
 0x93c   :  { %v480_v22 = vadd.f32 %v478_v20, %v3344_v8 }
 0x93d   :  { %v474_v23 = vpop.f32.mrf.mxu0 }
 0x93e   :  { %2871 = vtanh.f32 %v480_v22  ;;  %v2447_v26 = vmul.f32 -1.442695, %v480_v22 }
 0x93f   :  { %v2630_v24 = vpop.f32.mrf.mxu0 }
 0x940   :  { %2873 = vpow2.f32 %v2447_v26 }
 0x94b   :  { %v2872_v25 = vpop.eup %2871 }
 0x94c   :  { %493 = vrot.lane.b32.xlu0 %v2872_v25, %s3214_s12 }
 0x94d   :  { %v2874_v27 = vpop.eup %2873 }
 0x94e   :  { %v484_v28 = vadd.f32 1.0, %v2874_v27 }
 0x950   :  { %2875 = vrcp.f32 %v484_v28 }
 0x95d   :  { %v2876_v30 = vpop.eup %2875 }
 0x95e   :  { %v491_v34 = vmul.f32 %v2876_v30, %v489_v33 }
 0x9be   :  { %v494_v31 = vpop.permute.xlu0 %493 }
 0x9bf   :  { %v496_v32 = vmul.f32 %v2876_v30, %v494_v31 }
 0x9c1   :  { %498 = vrot.lane.b32.xlu1 %v496_v32, %s3224_s0 }
 0xa33   :  { %v499_v35 = vpop.permute.xlu1 %498 }
 0xa34   :  { %v501_v36 = vadd.f32 %v499_v35, %v491_v34 }
 0xa36   :  { %2877 = vtanh.f32 %v501_v36  ;;  %v576_v58 = vrot.slane %v501_v36, 7 }
 0xa43   :  { %v2878_v37 = vpop.eup %2877 }
 0xa44   :  { %504 = vrot.lane.b32.xlu0 %v2878_v37, %s3214_s12 }
 0xab6   :  { %v505_v38 = vpop.permute.xlu0 %504 }
 0xab7   :  { %v3398_v39 = vmul.f32 %v2876_v30, %v505_v38 }
 0xab9   :  { %v514_v40 = vpack.c.bf16 %v3398_v39, %v3398_v39 }
 0xabb   :  { %v516_v41 = vshrl.u32 %v514_v40, 16 }
 0xabd   :  { %v518_v42 = vrot.slane %v516_v41, 1 }
 0xabf   :  { %519 = vrot.lane.b32.xlu1 %v518_v42, %s3224_s0 }
 0xb31   :  { %v520_v43 = vpop.permute.xlu1 %519 }
 0xb32   :  { %2636 = vmatmul.mubr.msk.bf16.vlgmr.msra.gmra.mxu1 %vm184_vm2, %v520_v43 }
 0xb33   :  { %2648 = vmatpush3.bf16.msra.mxu1 %v3316_v3  ;;  %2651 = vmatprep.mubr.msk.bf16.mxu1 %vm3222_vm0, %v3221_v0 }
 0xb34   :  { %2649 = vmatprep.subr.bf16.mxu1 %v3221_v0 }
 0xb37   :  { %2650 = vmatpush3.bf16.msra.mxu1 %v3325_v5 }
 0xb38   :  { %2663 = vmatprep.subr.bf16.mxu1 %v3221_v0 }
 0xbf2   :  { %v558_v44 = vpop.f32.mrf.mxu1 }
 0xbf3   :  { %v565_v45 = vrot.slane %v558_v44, 4 }
 0xbf4   :  { %v2637_v46 = vpop.f32.mrf.mxu1 }
 0xbf5   :  { %v567_v47 = vadd.f32 %v565_v45, %v3344_v8 }
 0xbf6   :  { %v561_v48 = vpop.f32.mrf.mxu1 }
 0xbf7   :  { %2879 = vtanh.f32 %v567_v47  ;;  %v2449_v52 = vmul.f32 -1.442695, %v567_v47 }
 0xbf8   :  { %v2638_v49 = vpop.f32.mrf.mxu1 }
 0xbf9   :  { %2881 = vpow2.f32 %v2449_v52 }
 0xc04   :  { %v2880_v50 = vpop.eup %2879 }
 0xc05   :  { %580 = vrot.lane.b32.xlu0 %v2880_v50, %s3214_s12 }
 0xc06   :  { %v2882_v53 = vpop.eup %2881 }
 0xc07   :  { %v571_v54 = vadd.f32 1.0, %v2882_v53 }
 0xc09   :  { %2883 = vrcp.f32 %v571_v54 }
 0xc16   :  { %v2884_v55 = vpop.eup %2883 }
 0xc17   :  { %v578_v59 = vmul.f32 %v2884_v55, %v576_v58 }
 0xc77   :  { %v581_v56 = vpop.permute.xlu0 %580 }
 0xc78   :  { %v583_v57 = vmul.f32 %v2884_v55, %v581_v56 }
 0xc7a   :  { %585 = vrot.lane.b32.xlu1 %v583_v57, %s3224_s0 }
 0xcec   :  { %v586_v60 = vpop.permute.xlu1 %585 }
 0xced   :  { %v588_v61 = vadd.f32 %v586_v60, %v578_v59 }
 0xcef   :  { %2885 = vtanh.f32 %v588_v61  ;;  %v661_v21 = vrot.slane %v588_v61, 7 }
 0xcfc   :  { %v2886_v62 = vpop.eup %2885 }
 0xcfd   :  { %591 = vrot.lane.b32.xlu0 %v2886_v62, %s3214_s12 }
 0xd6f   :  { %v592_v63 = vpop.permute.xlu0 %591 }
 0xd70   :  { %v3414_v2 = vmul.f32 %v2884_v55, %v592_v63 }
 0xd72   :  { %v601_v4 = vpack.c.bf16 %v3414_v2, %v3414_v2 }
 0xd74   :  { %v603_v6 = vrot.slane %v601_v4, 2 }
 0xd76   :  { %604 = vrot.lane.b32.xlu1 %v603_v6, %s3224_s0 }
 0xde8   :  { %v605_v7 = vpop.permute.xlu1 %604 }
 0xde9   :  { %2644 = vmatmul.mubr.msk.bf16.vlgmr.msra.gmra.mxu0 %vm184_vm2, %v605_v7 }
 0xdea   :  { %2656 = vmatpush3.bf16.msra.mxu0 %v3316_v3  ;;  %2659 = vmatprep.mubr.msk.bf16.mxu0 %vm3222_vm0, %v3221_v0 }
 0xdeb   :  { %2657 = vmatprep.subr.bf16.mxu0 %v3221_v0 }
 0xdee   :  { %2658 = vmatpush3.bf16.msra.mxu0 %v3325_v5 }
 0xdef   :  { %2671 = vmatprep.subr.bf16.mxu0 %v3221_v0 }
 0xea9   :  { %v643_v9 = vpop.f32.mrf.mxu0 }
 0xeaa   :  { %v650_v10 = vrot.slane %v643_v9, 3 }
 0xeab   :  { %v2645_v11 = vpop.f32.mrf.mxu0 }
 0xeac   :  { %v652_v12 = vadd.f32 %v650_v10, %v3344_v8 }
 0xead   :  { %v646_v13 = vpop.f32.mrf.mxu0 }
 0xeae   :  { %2887 = vtanh.f32 %v652_v12  ;;  %v2451_v3 = vmul.f32 -1.442695, %v652_v12 }
 0xeaf   :  { %v2646_v14 = vpop.f32.mrf.mxu0 }
 0xeb0   :  { %2889 = vpow2.f32 %v2451_v3 }
 0xebb   :  { %v2888_v16 = vpop.eup %2887 }
 0xebc   :  { %665 = vrot.lane.b32.xlu0 %v2888_v16, %s3214_s12 }
 0xebd   :  { %v2890_v17 = vpop.eup %2889 }
 0xebe   :  { %v656_v18 = vadd.f32 1.0, %v2890_v17 }
 0xec0   :  { %2891 = vrcp.f32 %v656_v18  ;;  %v3462_v18 = vld [vmem:[%s3752_s4 + $0x18] sm:$0xff]  }
 0xecd   :  { %v2892_v19 = vpop.eup %2891 }
 0xece   :  { %v663_v22 = vmul.f32 %v2892_v19, %v661_v21 }
 0xf2e   :  { %v666_v5 = vpop.permute.xlu0 %665 }
 0xf2f   :  { %v668_v20 = vmul.f32 %v2892_v19, %v666_v5  ;;  %v3477_v5 = vld [vmem:[%s3752_s4 + $0x10] sm:$0xff]  }
 0xf31   :  { %670 = vrot.lane.b32.xlu1 %v668_v20, %s3224_s0  ;;  %v2840_v20 = vld [vmem:[#allocation8] sm:$0xff]  }
 0xfa3   :  { %v671_v23 = vpop.permute.xlu1 %670 }
 0xfa4   :  { %v673_v24 = vadd.f32 %v671_v23, %v663_v22 }
 0xfa6   :  { %2893 = vtanh.f32 %v673_v24  ;;  %v748_v47 = vrot.slane %v673_v24, 7 }
 0xfb3   :  { %v2894_v25 = vpop.eup %2893 }
 0xfb4   :  { %676 = vrot.lane.b32.xlu0 %v2894_v25, %s3214_s12 }
0x1026   :  { %v677_v26 = vpop.permute.xlu0 %676 }
0x1027   :  { %v3430_v27 = vmul.f32 %v2892_v19, %v677_v26  ;;  %v2838_v19 = vld [vmem:[#allocation8 + $0x8] sm:$0xff]  }
0x1029   :  { %v686_v28 = vpack.c.bf16 %v3430_v27, %v3430_v27 }
0x102b   :  { %v688_v30 = vshrl.u32 %v686_v28, 16 }
0x102d   :  { %v690_v31 = vrot.slane %v688_v30, 2 }
0x102f   :  { %691 = vrot.lane.b32.xlu1 %v690_v31, %s3224_s0 }
0x10a1   :  { %v692_v32 = vpop.permute.xlu1 %691 }
0x10a2   :  { %2652 = vmatmul.mubr.msk.bf16.vlgmr.msra.gmra.mxu1 %vm184_vm2, %v692_v32  ;;  %v2456_v32 = vld [vmem:[#allocation9 + $0x1] ss:$0 sm:$0xff] }
0x10a3   :  { %2667 = vmatprep.mubr.msk.bf16.mxu1 %vm3222_vm0, %v3221_v0  ;;  %2664 = vmatpush3.bf16.msra.mxu1 %v2838_v19 }
0x10a4   :  { %2665 = vmatprep.subr.bf16.mxu1 %v3221_v0 }
0x10a7   :  { %2666 = vmatpush3.bf16.msra.mxu1 %v2840_v20 }
0x10a8   :  { %2679 = vmatprep.subr.bf16.mxu1 %v3221_v0 }
0x1162   :  { %v730_v33 = vpop.f32.mrf.mxu1 }
0x1163   :  { %v737_v34 = vrot.slane %v730_v33, 2 }
0x1164   :  { %v2653_v35 = vpop.f32.mrf.mxu1 }
0x1165   :  { %v739_v36 = vadd.f32 %v737_v34, %v3344_v8 }
0x1166   :  { %v733_v37 = vpop.f32.mrf.mxu1 }
0x1167   :  { %2895 = vtanh.f32 %v739_v36  ;;  %v2453_v41 = vmul.f32 -1.442695, %v739_v36 }
0x1168   :  { %v2654_v38 = vpop.f32.mrf.mxu1 }
0x1169   :  { %2897 = vpow2.f32 %v2453_v41 }
0x1174   :  { %v2896_v40 = vpop.eup %2895 }
0x1175   :  { %752 = vrot.lane.b32.xlu0 %v2896_v40, %s3214_s12 }
0x1176   :  { %v2898_v42 = vpop.eup %2897 }
0x1177   :  { %v743_v43 = vadd.f32 1.0, %v2898_v42 }
0x1179   :  { %2899 = vrcp.f32 %v743_v43 }
0x1186   :  { %v2900_v44 = vpop.eup %2899 }
0x1187   :  { %v750_v48 = vmul.f32 %v2900_v44, %v748_v47 }
0x11e7   :  { %v753_v45 = vpop.permute.xlu0 %752 }
0x11e8   :  { %v755_v46 = vmul.f32 %v2900_v44, %v753_v45 }
0x11ea   :  { %757 = vrot.lane.b32.xlu1 %v755_v46, %s3224_s0 }
0x125c   :  { %v758_v49 = vpop.permute.xlu1 %757 }
0x125d   :  { %v760_v50 = vadd.f32 %v758_v49, %v750_v48 }
0x125f   :  { %2901 = vtanh.f32 %v760_v50 }
0x126c   :  { %v2902_v52 = vpop.eup %2901 }
0x126d   :  { %763 = vrot.lane.b32.xlu0 %v2902_v52, %s3214_s12 }
0x12df   :  { %v764_v53 = vpop.permute.xlu0 %763 }
0x12e0   :  { %v766_v54 = vmul.f32 %v2900_v44, %v764_v53 }
0x12e2   :  { %v773_v55 = vpack.c.bf16 %v766_v54, %v766_v54 }
0x12e4   :  { %v775_v56 = vrot.slane %v773_v55, 3 }
0x12e6   :  { %776 = vrot.lane.b32.xlu1 %v775_v56, %s3224_s0 }
0x1358   :  { %v777_v57 = vpop.permute.xlu1 %776 }
0x1359   :  { %2660 = vmatmul.mubr.msk.bf16.vlgmr.msra.gmra.mxu0 %vm184_vm2, %v777_v57 }
0x135a   :  { %2675 = vmatprep.mubr.msk.bf16.mxu0 %vm3222_vm0, %v3221_v0  ;;  %2672 = vmatpush3.bf16.msra.mxu0 %v3462_v18 }
0x135b   :  { %2673 = vmatprep.subr.bf16.mxu0 %v3221_v0 }
0x135e   :  { %2674 = vmatpush3.bf16.msra.mxu0 %v3477_v5 }
0x135f   :  { %2687 = vmatprep.subr.bf16.mxu0 %v3221_v0 }
0x1361   :  { %2676 = vmatmul.mubr.bf16.vlgmr.msra.gmra.mxu0 %v3223_v1 }
0x1362   :  { %2688 = vmatpush3.bf16.msra.mxu0 %v3462_v18  ;;  %2691 = vmatprep.mubr.msk.bf16.mxu0 %vm3222_vm0, %v3221_v0 }
0x1363   :  { %2689 = vmatprep.subr.bf16.mxu0 %v3221_v0 }
0x1366   :  { %2690 = vmatpush3.bf16.msra.mxu0 %v3477_v5 }
0x1367   :  { %2703 = vmatprep.subr.bf16.mxu0 %v3221_v0 }
0x1419   :  { %v815_v58 = vpop.f32.mrf.mxu0 }
0x141a   :  { %v822_v59 = vrot.slane %v815_v58, 1 }
0x141b   :  { %v2661_v60 = vpop.f32.mrf.mxu0 }
0x141c   :  { %v824_v61 = vadd.f32 %v822_v59, %v3344_v8  ;;  %v833_v8 = vrot.slane %v760_v50, 7 }
0x141d   :  { %v818_v62 = vpop.f32.mrf.mxu0 }
0x141e   :  { %2903 = vtanh.f32 %v824_v61  ;;  %v2455_v6 = vmul.f32 -1.442695, %v824_v61 }
0x141f   :  { %v2662_v63 = vpop.f32.mrf.mxu0 }
0x1420   :  { %2905 = vpow2.f32 %v2455_v6 }
0x142b   :  { %v2904_v4 = vpop.eup %2903 }
0x142c   :  { %837 = vrot.lane.b32.xlu0 %v2904_v4, %s3214_s12 }
0x142d   :  { %v2906_v7 = vpop.eup %2905 }
0x142e   :  { %v828_v9 = vadd.f32 1.0, %v2906_v7 }
0x1430   :  { %2907 = vrcp.f32 %v828_v9 }
0x143d   :  { %v2908_v10 = vpop.eup %2907 }
0x143e   :  { %v835_v13 = vmul.f32 %v2908_v10, %v833_v8 }
0x149e   :  { %v838_v11 = vpop.permute.xlu0 %837 }
0x149f   :  { %v840_v12 = vmul.f32 %v2908_v10, %v838_v11 }
0x14a1   :  { %842 = vrot.lane.b32.xlu1 %v840_v12, %s3224_s0 }
0x14a5   :  { %254 = vrot.lane.b32.xlu1 %v3350_v29, %s3224_s0 }
0x14a9   :  { %424 = vrot.lane.b32.xlu1 %v3382_v15, %s3224_s0 }
0x14ad   :  { %596 = vrot.lane.b32.xlu1 %v3414_v2, %s3224_s0 }
0x14b1   :  { %768 = vrot.lane.b32.xlu1 %v766_v54, %s3224_s0 }
0x1513   :  { %v843_v14 = vpop.permute.xlu1 %842 }
0x1514   :  { %v845_v16 = vadd.f32 %v843_v14, %v835_v13 }
0x1516   :  { %2909 = vtanh.f32 %v845_v16 }
0x1517   :  { %v255_v3 = vpop.permute.xlu1 %254 }
0x1518   :  { %258 = vst.msk [vmem:[#allocation2] sm:$0x1] %vm257_vm3, %v255_v3 }
0x151b   :  { %v425_v17 = vpop.permute.xlu1 %424 }
0x151c   :  { %428 = vst.msk [vmem:[#allocation2] sm:$0x4] %vm427_vm4, %v425_v17 }
0x151f   :  { %v597_v29 = vpop.permute.xlu1 %596 }
0x1520   :  { %600 = vst.msk [vmem:[#allocation2] sm:$0x10] %vm599_vm5, %v597_v29 }
0x1523   :  { %v2910_v15 = vpop.eup %2909  ;;  %v769_v2 = vpop.permute.xlu1 %768 }
0x1524   :  { %772 = vst.msk [vmem:[#allocation2] sm:$0x40] %vm771_vm6, %v769_v2  ;;  %848 = vrot.lane.b32.xlu0 %v2910_v15, %s3214_s12 }
0x1528   :  { %338 = vrot.lane.b32.xlu0 %v3366_v51, %s3224_s0 }
0x152c   :  { %509 = vrot.lane.b32.xlu0 %v3398_v39, %s3224_s0 }
0x1530   :  { %681 = vrot.lane.b32.xlu0 %v3430_v27, %s3224_s0  ;;  %v975_v27 = vpop.f32.mrf.mxu0 }
0x1532   :  { %v2677_v28 = vpop.f32.mrf.mxu0 }
0x1534   :  { %v978_v30 = vpop.f32.mrf.mxu0 }
0x1536   :  { %v2678_v31 = vpop.f32.mrf.mxu0 }
0x1596   :  { %v849_v51 = vpop.permute.xlu0 %848 }
0x1597   :  { %v851_v39 = vmul.f32 %v2908_v10, %v849_v51 }
0x1599   :  { %853 = vrot.lane.b32.xlu0 %v851_v39, %s3224_s0 }
0x159a   :  { %v339_v21 = vpop.permute.xlu0 %338 }
0x159b   :  { %342 = vst.msk [vmem:[#allocation2] sm:$0x2] %vm341_vm7, %v339_v21 }
0x159e   :  { %v510_v22 = vpop.permute.xlu0 %509 }
0x159f   :  { %513 = vst.msk [vmem:[#allocation2] sm:$0x8] %vm512_vm8, %v510_v22 }
0x15a2   :  { %v682_v23 = vpop.permute.xlu0 %681 }
0x15a3   :  { %685 = vst.msk [vmem:[#allocation2] sm:$0x20] %vm684_vm9, %v682_v23 }
0x160b   :  { %v854_v24 = vpop.permute.xlu0 %853 }
0x160c   :  { %857 = vst.msk [vmem:[#allocation2] sm:$0x80] %vm856_vm10, %v854_v24 }
0x1613   :  { %v858_v25 = vld [vmem:[#allocation2] sm:$0xff] }
0x1614   :  { %v859_v26 = vpack.c.bf16 %v858_v25, %v858_v25 }
0x1616   :  { %2668 = vmatmul.mubr.msk.bf16.vlgmr.msra.gmra.mxu1 %vm184_vm2, %v859_v26 }
0x1617   :  { %2680 = vmatpush3.bf16.msra.mxu1 %v3462_v18  ;;  %2683 = vmatprep.mubr.msk.bf16.mxu1 %vm3222_vm0, %v3221_v0 }
0x1618   :  { %2681 = vmatprep.subr.bf16.mxu1 %v3221_v0 }
0x161b   :  { %2682 = vmatpush3.bf16.msra.mxu1 %v3477_v5 }
0x161c   :  { %2695 = vmatprep.subr.bf16.mxu1 %v3221_v0 }
0x16d6   :  { %v918_v33 = vpop.f32.mrf.mxu1 }
0x16d7   :  { %v3502_v34 = vadd.f32 %v2456_v32, %v918_v33 }
0x16d8   :  { %v2669_v35 = vpop.f32.mrf.mxu1 }
0x16d9   :  { %v981_v36 = vadd.f32 %v975_v27, %v3502_v34 }
0x16da   :  { %v921_v37 = vpop.f32.mrf.mxu1 }
0x16db   :  { %2911 = vtanh.f32 %v981_v36  ;;  %v2466_v41 = vmul.f32 -1.442695, %v981_v36 }
0x16dc   :  { %v2670_v38 = vpop.f32.mrf.mxu1 }
0x16dd   :  { %2913 = vpow2.f32 %v2466_v41 }
0x16e8   :  { %v2912_v40 = vpop.eup %2911 }
0x16e9   :  { %991 = vrot.lane.b32.xlu1 %v2912_v40, %s3214_s12 }
0x16ea   :  { %v2914_v42 = vpop.eup %2913 }
0x16eb   :  { %v985_v43 = vadd.f32 1.0, %v2914_v42 }
0x16ed   :  { %2915 = vrcp.f32 %v985_v43 }
0x16fa   :  { %v2916_v44 = vpop.eup %2915 }
0x16fb   :  { %v989_v47 = vmul.f32 0.0, %v2916_v44 }
0x175b   :  { %v992_v45 = vpop.permute.xlu1 %991 }
0x175c   :  { %v994_v46 = vmul.f32 %v2916_v44, %v992_v45 }
0x175e   :  { %996 = vrot.lane.b32.xlu0 %v994_v46, %s3224_s0 }
0x17d0   :  { %v997_v48 = vpop.permute.xlu0 %996 }
0x17d1   :  { %v999_v49 = vadd.f32 %v997_v48, %v989_v47 }
0x17d3   :  { %2917 = vtanh.f32 %v999_v49  ;;  %v1070_v11 = vrot.slane %v999_v49, 7 }
0x17e0   :  { %v2918_v50 = vpop.eup %2917 }
0x17e1   :  { %1002 = vrot.lane.b32.xlu1 %v2918_v50, %s3214_s12 }
0x1853   :  { %v1003_v52 = vpop.permute.xlu1 %1002 }
0x1854   :  { %v3508_v53 = vmul.f32 %v2916_v44, %v1003_v52 }
0x1856   :  { %v1011_v54 = vpack.c.bf16 %v3508_v53, %v3508_v53 }
0x1858   :  { %1013 = vrot.lane.b32.xlu0 %v1011_v54, %s3224_s0 }
0x18ca   :  { %v1014_v55 = vpop.permute.xlu0 %1013 }
0x18cb   :  { %2684 = vmatmul.mubr.msk.bf16.vlgmr.msra.gmra.mxu1 %vm184_vm2, %v1014_v55 }
0x18cc   :  { %2696 = vmatpush3.bf16.msra.mxu1 %v3462_v18  ;;  %2699 = vmatprep.mubr.msk.bf16.mxu1 %vm3222_vm0, %v3221_v0 }
0x18cd   :  { %2697 = vmatprep.subr.bf16.mxu1 %v3221_v0 }
0x18d0   :  { %2698 = vmatpush3.bf16.msra.mxu1 %v3477_v5 }
0x18d1   :  { %2711 = vmatprep.subr.bf16.mxu1 %v3221_v0 }
0x198b   :  { %v1052_v56 = vpop.f32.mrf.mxu1 }
0x198c   :  { %v1059_v57 = vrot.slane %v1052_v56, 7 }
0x198d   :  { %v2685_v58 = vpop.f32.mrf.mxu1 }
0x198e   :  { %v1061_v59 = vadd.f32 %v1059_v57, %v3502_v34 }
0x198f   :  { %v1055_v60 = vpop.f32.mrf.mxu1 }
0x1990   :  { %2919 = vtanh.f32 %v1061_v59  ;;  %v2468_v63 = vmul.f32 -1.442695, %v1061_v59 }
0x1991   :  { %v2686_v61 = vpop.f32.mrf.mxu1 }
0x1992   :  { %2921 = vpow2.f32 %v2468_v63 }
0x199d   :  { %v2920_v62 = vpop.eup %2919 }
0x199e   :  { %1074 = vrot.lane.b32.xlu1 %v2920_v62, %s3214_s12 }
0x199f   :  { %v2922_v4 = vpop.eup %2921 }
0x19a0   :  { %v1065_v6 = vadd.f32 1.0, %v2922_v4 }
0x19a2   :  { %2923 = vrcp.f32 %v1065_v6 }
0x19af   :  { %v2924_v7 = vpop.eup %2923 }
0x19b0   :  { %v1072_v12 = vmul.f32 %v2924_v7, %v1070_v11 }
0x1a10   :  { %v1075_v9 = vpop.permute.xlu1 %1074 }
0x1a11   :  { %v1077_v10 = vmul.f32 %v2924_v7, %v1075_v9 }
0x1a13   :  { %1079 = vrot.lane.b32.xlu0 %v1077_v10, %s3224_s0 }
0x1a85   :  { %v1080_v8 = vpop.permute.xlu0 %1079 }
0x1a86   :  { %v1082_v13 = vadd.f32 %v1080_v8, %v1072_v12 }
0x1a88   :  { %2925 = vtanh.f32 %v1082_v13  ;;  %v1155_v30 = vrot.slane %v1082_v13, 7 }
0x1a95   :  { %v2926_v14 = vpop.eup %2925 }
0x1a96   :  { %1085 = vrot.lane.b32.xlu1 %v2926_v14, %s3214_s12 }
0x1b08   :  { %v1086_v16 = vpop.permute.xlu1 %1085 }
0x1b09   :  { %v3524_v3 = vmul.f32 %v2924_v7, %v1086_v16 }
0x1b0b   :  { %v1094_v17 = vpack.c.bf16 %v3524_v3, %v3524_v3 }
0x1b0d   :  { %v1096_v29 = vshrl.u32 %v1094_v17, 16 }
0x1b0f   :  { %1098 = vrot.lane.b32.xlu0 %v1096_v29, %s3224_s0 }
0x1b81   :  { %v1099_v15 = vpop.permute.xlu0 %1098 }
0x1b82   :  { %2692 = vmatmul.mubr.msk.bf16.vlgmr.msra.gmra.mxu0 %vm184_vm2, %v1099_v15 }
0x1b83   :  { %2704 = vmatpush3.bf16.msra.mxu0 %v3462_v18  ;;  %2707 = vmatprep.mubr.msk.bf16.mxu0 %vm3222_vm0, %v3221_v0 }
0x1b84   :  { %2705 = vmatprep.subr.bf16.mxu0 %v3221_v0 }
0x1b87   :  { %2706 = vmatpush3.bf16.msra.mxu0 %v3477_v5 }
0x1b88   :  { %2719 = vmatprep.subr.bf16.mxu0 %v3221_v0 }
0x1c42   :  { %v1137_v2 = vpop.f32.mrf.mxu0 }
0x1c43   :  { %v1144_v19 = vrot.slane %v1137_v2, 6 }
0x1c44   :  { %v2693_v20 = vpop.f32.mrf.mxu0 }
0x1c45   :  { %v1146_v51 = vadd.f32 %v1144_v19, %v3502_v34 }
0x1c46   :  { %v1140_v39 = vpop.f32.mrf.mxu0 }
0x1c47   :  { %2927 = vtanh.f32 %v1146_v51  ;;  %v2470_v23 = vmul.f32 -1.442695, %v1146_v51 }
0x1c48   :  { %v2694_v21 = vpop.f32.mrf.mxu0 }
0x1c49   :  { %2929 = vpow2.f32 %v2470_v23 }
0x1c54   :  { %v2928_v22 = vpop.eup %2927 }
0x1c55   :  { %1159 = vrot.lane.b32.xlu1 %v2928_v22, %s3214_s12 }
0x1c56   :  { %v2930_v24 = vpop.eup %2929 }
0x1c57   :  { %v1150_v25 = vadd.f32 1.0, %v2930_v24 }
0x1c59   :  { %2931 = vrcp.f32 %v1150_v25 }
0x1c66   :  { %v2932_v26 = vpop.eup %2931 }
0x1c67   :  { %v1157_v31 = vmul.f32 %v2932_v26, %v1155_v30 }
0x1cc7   :  { %v1160_v27 = vpop.permute.xlu1 %1159 }
0x1cc8   :  { %v1162_v28 = vmul.f32 %v2932_v26, %v1160_v27 }
0x1cca   :  { %1164 = vrot.lane.b32.xlu0 %v1162_v28, %s3224_s0 }
0x1d3c   :  { %v1165_v32 = vpop.permute.xlu0 %1164 }
0x1d3d   :  { %v1167_v33 = vadd.f32 %v1165_v32, %v1157_v31 }
0x1d3f   :  { %2933 = vtanh.f32 %v1167_v33  ;;  %v1239_v57 = vrot.slane %v1167_v33, 7 }
0x1d4c   :  { %v2934_v35 = vpop.eup %2933 }
0x1d4d   :  { %1170 = vrot.lane.b32.xlu1 %v2934_v35, %s3214_s12 }
0x1dbf   :  { %v1171_v36 = vpop.permute.xlu1 %1170 }
0x1dc0   :  { %v3540_v37 = vmul.f32 %v2932_v26, %v1171_v36 }
0x1dc2   :  { %v1179_v38 = vpack.c.bf16 %v3540_v37, %v3540_v37 }
0x1dc4   :  { %v1181_v40 = vrot.slane %v1179_v38, 1 }
0x1dc6   :  { %1182 = vrot.lane.b32.xlu0 %v1181_v40, %s3224_s0 }
0x1e38   :  { %v1183_v41 = vpop.permute.xlu0 %1182 }
0x1e39   :  { %2700 = vmatmul.mubr.msk.bf16.vlgmr.msra.gmra.mxu1 %vm184_vm2, %v1183_v41 }
0x1e3a   :  { %2712 = vmatpush3.bf16.msra.mxu1 %v3462_v18  ;;  %2715 = vmatprep.mubr.msk.bf16.mxu1 %vm3222_vm0, %v3221_v0 }
0x1e3b   :  { %2713 = vmatprep.subr.bf16.mxu1 %v3221_v0 }
0x1e3e   :  { %2714 = vmatpush3.bf16.msra.mxu1 %v3477_v5 }
0x1e3f   :  { %2727 = vmatprep.subr.bf16.mxu1 %v3221_v0 }
0x1ef9   :  { %v1221_v42 = vpop.f32.mrf.mxu1 }
0x1efa   :  { %v1228_v43 = vrot.slane %v1221_v42, 5 }
0x1efb   :  { %v2701_v44 = vpop.f32.mrf.mxu1 }
0x1efc   :  { %v1230_v45 = vadd.f32 %v1228_v43, %v3502_v34 }
0x1efd   :  { %v1224_v46 = vpop.f32.mrf.mxu1 }
0x1efe   :  { %2935 = vtanh.f32 %v1230_v45  ;;  %v2472_v49 = vmul.f32 -1.442695, %v1230_v45 }
0x1eff   :  { %v2702_v47 = vpop.f32.mrf.mxu1 }
0x1f00   :  { %2937 = vpow2.f32 %v2472_v49 }
0x1f0b   :  { %v2936_v48 = vpop.eup %2935 }
0x1f0c   :  { %1243 = vrot.lane.b32.xlu1 %v2936_v48, %s3214_s12 }
0x1f0d   :  { %v2938_v50 = vpop.eup %2937 }
0x1f0e   :  { %v1234_v52 = vadd.f32 1.0, %v2938_v50 }
0x1f10   :  { %2939 = vrcp.f32 %v1234_v52 }
0x1f1d   :  { %v2940_v54 = vpop.eup %2939 }
0x1f1e   :  { %v1241_v58 = vmul.f32 %v2940_v54, %v1239_v57 }
0x1f7e   :  { %v1244_v55 = vpop.permute.xlu1 %1243 }
0x1f7f   :  { %v1246_v56 = vmul.f32 %v2940_v54, %v1244_v55 }
0x1f81   :  { %1248 = vrot.lane.b32.xlu0 %v1246_v56, %s3224_s0 }
0x1ff3   :  { %v1249_v59 = vpop.permute.xlu0 %1248 }
0x1ff4   :  { %v1251_v60 = vadd.f32 %v1249_v59, %v1241_v58 }
0x1ff6   :  { %2941 = vtanh.f32 %v1251_v60  ;;  %v1325_v51 = vrot.slane %v1251_v60, 7 }
0x2003   :  { %v2942_v61 = vpop.eup %2941 }
0x2004   :  { %1254 = vrot.lane.b32.xlu1 %v2942_v61, %s3214_s12 }
0x2076   :  { %v1255_v62 = vpop.permute.xlu1 %1254 }
0x2077   :  { %v3556_v63 = vmul.f32 %v2940_v54, %v1255_v62 }
0x2079   :  { %v1263_v4 = vpack.c.bf16 %v3556_v63, %v3556_v63 }
0x207b   :  { %v1265_v6 = vshrl.u32 %v1263_v4, 16 }
0x207d   :  { %v1267_v7 = vrot.slane %v1265_v6, 1 }
0x207f   :  { %1268 = vrot.lane.b32.xlu0 %v1267_v7, %s3224_s0 }
0x20f1   :  { %v1269_v9 = vpop.permute.xlu0 %1268 }
0x20f2   :  { %2708 = vmatmul.mubr.msk.bf16.vlgmr.msra.gmra.mxu0 %vm184_vm2, %v1269_v9 }
0x20f3   :  { %2720 = vmatpush3.bf16.msra.mxu0 %v3462_v18  ;;  %2723 = vmatprep.mubr.msk.bf16.mxu0 %vm3222_vm0, %v3221_v0 }
0x20f4   :  { %2721 = vmatprep.subr.bf16.mxu0 %v3221_v0 }
0x20f7   :  { %2722 = vmatpush3.bf16.msra.mxu0 %v3477_v5 }
0x20f8   :  { %2735 = vmatprep.subr.bf16.mxu0 %v3221_v0 }
0x21b2   :  { %v1307_v10 = vpop.f32.mrf.mxu0 }
0x21b3   :  { %v1314_v11 = vrot.slane %v1307_v10, 4 }
0x21b4   :  { %v2709_v12 = vpop.f32.mrf.mxu0 }
0x21b5   :  { %v1316_v8 = vadd.f32 %v1314_v11, %v3502_v34 }
0x21b6   :  { %v1310_v13 = vpop.f32.mrf.mxu0 }
0x21b7   :  { %2943 = vtanh.f32 %v1316_v8  ;;  %v2474_v17 = vmul.f32 -1.442695, %v1316_v8 }
0x21b8   :  { %v2710_v14 = vpop.f32.mrf.mxu0 }
0x21b9   :  { %2945 = vpow2.f32 %v2474_v17 }
0x21c4   :  { %v2944_v16 = vpop.eup %2943 }
0x21c5   :  { %1329 = vrot.lane.b32.xlu1 %v2944_v16, %s3214_s12 }
0x21c6   :  { %v2946_v29 = vpop.eup %2945 }
0x21c7   :  { %v1320_v15 = vadd.f32 1.0, %v2946_v29 }
0x21c9   :  { %2947 = vrcp.f32 %v1320_v15 }
0x21d6   :  { %v2948_v2 = vpop.eup %2947 }
0x21d7   :  { %v1327_v39 = vmul.f32 %v2948_v2, %v1325_v51 }
0x2237   :  { %v1330_v19 = vpop.permute.xlu1 %1329 }
0x2238   :  { %v1332_v20 = vmul.f32 %v2948_v2, %v1330_v19 }
0x223a   :  { %1334 = vrot.lane.b32.xlu0 %v1332_v20, %s3224_s0 }
0x22ac   :  { %v1335_v21 = vpop.permute.xlu0 %1334 }
0x22ad   :  { %v1337_v22 = vadd.f32 %v1335_v21, %v1327_v39 }
0x22af   :  { %2949 = vtanh.f32 %v1337_v22  ;;  %v1409_v44 = vrot.slane %v1337_v22, 7 }
0x22bc   :  { %v2950_v23 = vpop.eup %2949 }
0x22bd   :  { %1340 = vrot.lane.b32.xlu1 %v2950_v23, %s3214_s12 }
0x232f   :  { %v1341_v24 = vpop.permute.xlu1 %1340 }
0x2330   :  { %v3572_v25 = vmul.f32 %v2948_v2, %v1341_v24 }
0x2332   :  { %v1349_v26 = vpack.c.bf16 %v3572_v25, %v3572_v25 }
0x2334   :  { %v1351_v27 = vrot.slane %v1349_v26, 2 }
0x2336   :  { %1352 = vrot.lane.b32.xlu0 %v1351_v27, %s3224_s0 }
0x23a8   :  { %v1353_v28 = vpop.permute.xlu0 %1352 }
0x23a9   :  { %2716 = vmatmul.mubr.msk.bf16.vlgmr.msra.gmra.mxu1 %vm184_vm2, %v1353_v28 }
0x23aa   :  { %2728 = vmatpush3.bf16.msra.mxu1 %v3462_v18  ;;  %2731 = vmatprep.mubr.msk.bf16.mxu1 %vm3222_vm0, %v3221_v0 }
0x23ab   :  { %2729 = vmatprep.subr.bf16.mxu1 %v3221_v0 }
0x23ae   :  { %2730 = vmatpush3.bf16.msra.mxu1 %v3477_v5 }
0x23af   :  { %2743 = vmatprep.subr.bf16.mxu1 %v3221_v0 }
0x2469   :  { %v1391_v30 = vpop.f32.mrf.mxu1 }
0x246a   :  { %v1398_v31 = vrot.slane %v1391_v30, 3 }
0x246b   :  { %v2717_v32 = vpop.f32.mrf.mxu1 }
0x246c   :  { %v1400_v33 = vadd.f32 %v1398_v31, %v3502_v34 }
0x246d   :  { %v1394_v35 = vpop.f32.mrf.mxu1 }
0x246e   :  { %2951 = vtanh.f32 %v1400_v33  ;;  %v2476_v18 = vmul.f32 -1.442695, %v1400_v33 }
0x246f   :  { %v2718_v36 = vpop.f32.mrf.mxu1 }
0x2470   :  { %2953 = vpow2.f32 %v2476_v18 }
0x247b   :  { %v2952_v38 = vpop.eup %2951 }
0x247c   :  { %1413 = vrot.lane.b32.xlu1 %v2952_v38, %s3214_s12 }
0x247d   :  { %v2954_v40 = vpop.eup %2953 }
0x247e   :  { %v1404_v41 = vadd.f32 1.0, %v2954_v40 }
0x2480   :  { %2955 = vrcp.f32 %v1404_v41 }
0x248d   :  { %v2956_v42 = vpop.eup %2955 }
0x248e   :  { %v1411_v45 = vmul.f32 %v2956_v42, %v1409_v44 }
0x24ee   :  { %v1414_v5 = vpop.permute.xlu1 %1413 }
0x24ef   :  { %v1416_v43 = vmul.f32 %v2956_v42, %v1414_v5  ;;  %v3635_v5 = vld [vmem:[%s3752_s4 + $0x20] sm:$0xff]  }
0x24f1   :  { %1418 = vrot.lane.b32.xlu0 %v1416_v43, %s3224_s0  ;;  %v2844_v43 = vld [vmem:[#allocation8 + $0x10] sm:$0xff]  }
0x2563   :  { %v1419_v46 = vpop.permute.xlu0 %1418 }
0x2564   :  { %v1421_v47 = vadd.f32 %v1419_v46, %v1411_v45 }
0x2566   :  { %2957 = vtanh.f32 %v1421_v47  ;;  %v1495_v8 = vrot.slane %v1421_v47, 7 }
0x2573   :  { %v2958_v48 = vpop.eup %2957 }
0x2574   :  { %1424 = vrot.lane.b32.xlu1 %v2958_v48, %s3214_s12 }
0x25e6   :  { %v1425_v49 = vpop.permute.xlu1 %1424 }
0x25e7   :  { %v3588_v50 = vmul.f32 %v2956_v42, %v1425_v49  ;;  %v2842_v42 = vld [vmem:[#allocation8 + $0x18] sm:$0xff]  }
0x25e9   :  { %v1433_v52 = vpack.c.bf16 %v3588_v50, %v3588_v50 }
0x25eb   :  { %v1435_v54 = vshrl.u32 %v1433_v52, 16 }
0x25ed   :  { %v1437_v55 = vrot.slane %v1435_v54, 2 }
0x25ef   :  { %1438 = vrot.lane.b32.xlu0 %v1437_v55, %s3224_s0  ;;  %v2481_v55 = vld [vmem:[#allocation9 + $0x2] ss:$0 sm:$0xff] }
0x2661   :  { %v1439_v56 = vpop.permute.xlu0 %1438 }
0x2662   :  { %2724 = vmatmul.mubr.msk.bf16.vlgmr.msra.gmra.mxu0 %vm184_vm2, %v1439_v56 }
0x2663   :  { %2739 = vmatprep.mubr.msk.bf16.mxu0 %vm3222_vm0, %v3221_v0  ;;  %2736 = vmatpush3.bf16.msra.mxu0 %v2842_v42 }
0x2664   :  { %2737 = vmatprep.subr.bf16.mxu0 %v3221_v0 }
0x2667   :  { %2738 = vmatpush3.bf16.msra.mxu0 %v2844_v43 }
0x2668   :  { %2751 = vmatprep.subr.bf16.mxu0 %v3221_v0 }
0x2722   :  { %v1477_v57 = vpop.f32.mrf.mxu0 }
0x2723   :  { %v1484_v58 = vrot.slane %v1477_v57, 2 }
0x2724   :  { %v2725_v59 = vpop.f32.mrf.mxu0 }
0x2725   :  { %v1486_v60 = vadd.f32 %v1484_v58, %v3502_v34 }
0x2726   :  { %v1480_v61 = vpop.f32.mrf.mxu0 }
0x2727   :  { %2959 = vtanh.f32 %v1486_v60  ;;  %v2478_v6 = vmul.f32 -1.442695, %v1486_v60 }
0x2728   :  { %v2726_v62 = vpop.f32.mrf.mxu0 }
0x2729   :  { %2961 = vpow2.f32 %v2478_v6 }
0x2734   :  { %v2960_v4 = vpop.eup %2959 }
0x2735   :  { %1499 = vrot.lane.b32.xlu1 %v2960_v4, %s3214_s12 }
0x2736   :  { %v2962_v7 = vpop.eup %2961 }
0x2737   :  { %v1490_v9 = vadd.f32 1.0, %v2962_v7 }
0x2739   :  { %2963 = vrcp.f32 %v1490_v9 }
0x2746   :  { %v2964_v10 = vpop.eup %2963 }
0x2747   :  { %v1497_v13 = vmul.f32 %v2964_v10, %v1495_v8 }
0x27a7   :  { %v1500_v11 = vpop.permute.xlu1 %1499 }
0x27a8   :  { %v1502_v12 = vmul.f32 %v2964_v10, %v1500_v11 }
0x27aa   :  { %1504 = vrot.lane.b32.xlu0 %v1502_v12, %s3224_s0 }
0x281c   :  { %v1505_v14 = vpop.permute.xlu0 %1504 }
0x281d   :  { %v1507_v16 = vadd.f32 %v1505_v14, %v1497_v13 }
0x281f   :  { %2965 = vtanh.f32 %v1507_v16 }
0x282c   :  { %v2966_v17 = vpop.eup %2965 }
0x282d   :  { %1510 = vrot.lane.b32.xlu1 %v2966_v17, %s3214_s12 }
0x289f   :  { %v1511_v29 = vpop.permute.xlu1 %1510 }
0x28a0   :  { %v1513_v15 = vmul.f32 %v2964_v10, %v1511_v29 }
0x28a2   :  { %v1519_v2 = vpack.c.bf16 %v1513_v15, %v1513_v15 }
0x28a4   :  { %v1521_v19 = vrot.slane %v1519_v2, 3 }
0x28a6   :  { %1522 = vrot.lane.b32.xlu0 %v1521_v19, %s3224_s0 }
0x2918   :  { %v1523_v20 = vpop.permute.xlu0 %1522 }
0x2919   :  { %2732 = vmatmul.mubr.msk.bf16.vlgmr.msra.gmra.mxu1 %vm184_vm2, %v1523_v20 }
0x291a   :  { %2747 = vmatprep.mubr.msk.bf16.mxu1 %vm3222_vm0, %v3221_v0 }
0x29d9   :  { %v1561_v51 = vpop.f32.mrf.mxu1 }
0x29da   :  { %v1568_v39 = vrot.slane %v1561_v51, 1 }
0x29db   :  { %v2733_v21 = vpop.f32.mrf.mxu1 }
0x29dc   :  { %v1570_v22 = vadd.f32 %v1568_v39, %v3502_v34  ;;  %v1579_v34 = vrot.slane %v1507_v16, 7 }
0x29dd   :  { %v1564_v23 = vpop.f32.mrf.mxu1 }
0x29de   :  { %2967 = vtanh.f32 %v1570_v22  ;;  %v2480_v27 = vmul.f32 -1.442695, %v1570_v22 }
0x29df   :  { %v2734_v24 = vpop.f32.mrf.mxu1 }
0x29e0   :  { %2969 = vpow2.f32 %v2480_v27 }
0x29eb   :  { %v2968_v26 = vpop.eup %2967 }
0x29ec   :  { %1583 = vrot.lane.b32.xlu1 %v2968_v26, %s3214_s12 }
0x29ed   :  { %v2970_v28 = vpop.eup %2969 }
0x29ee   :  { %v1574_v30 = vadd.f32 1.0, %v2970_v28 }
0x29f0   :  { %2971 = vrcp.f32 %v1574_v30 }
0x29fd   :  { %v2972_v31 = vpop.eup %2971 }
0x29fe   :  { %v1581_v35 = vmul.f32 %v2972_v31, %v1579_v34 }
0x2a5e   :  { %v1584_v32 = vpop.permute.xlu1 %1583 }
0x2a5f   :  { %v1586_v33 = vmul.f32 %v2972_v31, %v1584_v32 }
0x2a61   :  { %1588 = vrot.lane.b32.xlu0 %v1586_v33, %s3224_s0 }
0x2a65   :  { %1007 = vrot.lane.b32.xlu0 %v3508_v53, %s3224_s0 }
0x2a69   :  { %1175 = vrot.lane.b32.xlu0 %v3540_v37, %s3224_s0 }
0x2a6d   :  { %1345 = vrot.lane.b32.xlu0 %v3572_v25, %s3224_s0  ;;  %v3620_v25 = vld [vmem:[%s3752_s4 + $0x28] sm:$0xff]   ;;  %s3226_s4 = smov 127  }
0x2a6e   :  { %2744 = vmatpush3.bf16.msra.mxu1 %v3620_v25 }
0x2a6f   :  { %2745 = vmatprep.subr.bf16.mxu1 %v3221_v0 }
0x2a71   :  { %1515 = vrot.lane.b32.xlu0 %v1513_v15, %s3224_s0 }
0x2a72   :  { %2746 = vmatpush3.bf16.msra.mxu1 %v3635_v5 }
0x2a73   :  { %2759 = vmatprep.subr.bf16.mxu1 %v3221_v0 }
0x2a75   :  { %2748 = vmatmul.mubr.bf16.vlgmr.msra.gmra.mxu1 %v3223_v1 }
0x2a76   :  { %2760 = vmatpush3.bf16.msra.mxu1 %v3620_v25  ;;  %2763 = vmatprep.mubr.msk.bf16.mxu1 %vm3222_vm0, %v3221_v0 }
0x2a77   :  { %2761 = vmatprep.subr.bf16.mxu1 %v3221_v0 }
0x2a7a   :  { %2762 = vmatpush3.bf16.msra.mxu1 %v3635_v5 }
0x2a7b   :  { %2775 = vmatprep.subr.bf16.mxu1 %v3221_v0 }
0x2ad3   :  { %v1589_v36 = vpop.permute.xlu0 %1588 }
0x2ad4   :  { %v1591_v38 = vadd.f32 %v1589_v36, %v1581_v35 }
0x2ad6   :  { %2973 = vtanh.f32 %v1591_v38 }
0x2ad7   :  { %v1008_v18 = vpop.permute.xlu0 %1007 }
0x2ad8   :  { %1010 = vst.msk [vmem:[#allocation2] sm:$0x1] %vm257_vm3, %v1008_v18 }
0x2adb   :  { %v1176_v40 = vpop.permute.xlu0 %1175 }
0x2adc   :  { %1178 = vst.msk [vmem:[#allocation2] sm:$0x4] %vm427_vm4, %v1176_v40 }
0x2adf   :  { %v1346_v53 = vpop.permute.xlu0 %1345 }
0x2ae0   :  { %1348 = vst.msk [vmem:[#allocation2] sm:$0x10] %vm599_vm5, %v1346_v53 }
0x2ae3   :  { %v2974_v37 = vpop.eup %2973  ;;  %v1516_v41 = vpop.permute.xlu0 %1515 }
0x2ae4   :  { %1518 = vst.msk [vmem:[#allocation2] sm:$0x40] %vm771_vm6, %v1516_v41  ;;  %1594 = vrot.lane.b32.xlu1 %v2974_v37, %s3214_s12 }
0x2ae8   :  { %1090 = vrot.lane.b32.xlu1 %v3524_v3, %s3224_s0 }
0x2aec   :  { %1259 = vrot.lane.b32.xlu1 %v3556_v63, %s3224_s0 }
0x2af0   :  { %1429 = vrot.lane.b32.xlu1 %v3588_v50, %s3224_s0 }
0x2b35   :  { %v1721_v49 = vpop.f32.mrf.mxu1 }
0x2b37   :  { %v2749_v50 = vpop.f32.mrf.mxu1 }
0x2b39   :  { %v1724_v52 = vpop.f32.mrf.mxu1 }
0x2b3b   :  { %v2750_v54 = vpop.f32.mrf.mxu1 }
0x2b56   :  { %v1595_v3 = vpop.permute.xlu1 %1594 }
0x2b57   :  { %v1597_v63 = vmul.f32 %v2972_v31, %v1595_v3 }
0x2b59   :  { %1599 = vrot.lane.b32.xlu1 %v1597_v63, %s3224_s0 }
0x2b5a   :  { %v1091_v44 = vpop.permute.xlu1 %1090 }
0x2b5b   :  { %1093 = vst.msk [vmem:[#allocation2] sm:$0x2] %vm341_vm7, %v1091_v44 }
0x2b5e   :  { %v1260_v1 = vpop.permute.xlu1 %1259 }
0x2b5f   :  { %1262 = vst.msk [vmem:[#allocation2] sm:$0x8] %vm512_vm8, %v1260_v1 }
0x2b62   :  { %v1430_v45 = vpop.permute.xlu1 %1429 }
0x2b63   :  { %1432 = vst.msk [vmem:[#allocation2] sm:$0x20] %vm684_vm9, %v1430_v45 }
0x2bcb   :  { %v1600_v46 = vpop.permute.xlu1 %1599 }
0x2bcc   :  { %1602 = vst.msk [vmem:[#allocation2] sm:$0x80] %vm856_vm10, %v1600_v46 }
0x2bd3   :  { %v1603_v47 = vld [vmem:[#allocation2] sm:$0xff] }
0x2bd4   :  { %v1604_v48 = vpack.c.bf16 %v1603_v47, %v1603_v47 }
0x2bd6   :  { %2740 = vmatmul.mubr.msk.bf16.vlgmr.msra.gmra.mxu0 %vm184_vm2, %v1604_v48 }
0x2bd7   :  { %2752 = vmatpush3.bf16.msra.mxu0 %v3620_v25  ;;  %2755 = vmatprep.mubr.msk.bf16.mxu0 %vm3222_vm0, %v3221_v0 }
0x2bd8   :  { %2753 = vmatprep.subr.bf16.mxu0 %v3221_v0 }
0x2bdb   :  { %2754 = vmatpush3.bf16.msra.mxu0 %v3635_v5 }
0x2bdc   :  { %2767 = vmatprep.subr.bf16.mxu0 %v3221_v0 }
0x2c96   :  { %v1664_v56 = vpop.f32.mrf.mxu0 }
0x2c97   :  { %v3660_v57 = vadd.f32 %v2481_v55, %v1664_v56 }
0x2c98   :  { %v2741_v58 = vpop.f32.mrf.mxu0 }
0x2c99   :  { %v1727_v59 = vadd.f32 %v1721_v49, %v3660_v57 }
0x2c9a   :  { %v1667_v60 = vpop.f32.mrf.mxu0 }
0x2c9b   :  { %2975 = vtanh.f32 %v1727_v59  ;;  %v2491_v4 = vmul.f32 -1.442695, %v1727_v59 }
0x2c9c   :  { %v2742_v61 = vpop.f32.mrf.mxu0 }
0x2c9d   :  { %2977 = vpow2.f32 %v2491_v4 }
0x2ca8   :  { %v2976_v62 = vpop.eup %2975 }
0x2ca9   :  { %1737 = vrot.lane.b32.xlu0 %v2976_v62, %s3214_s12 }
0x2caa   :  { %v2978_v6 = vpop.eup %2977 }
0x2cab   :  { %v1731_v7 = vadd.f32 1.0, %v2978_v6 }
0x2cad   :  { %2979 = vrcp.f32 %v1731_v7 }
0x2cba   :  { %v2980_v9 = vpop.eup %2979 }
0x2cbb   :  { %v1735_v12 = vmul.f32 0.0, %v2980_v9 }
0x2d1b   :  { %v1738_v10 = vpop.permute.xlu0 %1737 }
0x2d1c   :  { %v1740_v11 = vmul.f32 %v2980_v9, %v1738_v10 }
0x2d1e   :  { %1742 = vrot.lane.b32.xlu1 %v1740_v11, %s3224_s0 }
0x2d90   :  { %v1743_v8 = vpop.permute.xlu1 %1742 }
0x2d91   :  { %v1745_v13 = vadd.f32 %v1743_v8, %v1735_v12 }
0x2d93   :  { %2981 = vtanh.f32 %v1745_v13  ;;  %v1811_v31 = vrot.slane %v1745_v13, 7 }
0x2da0   :  { %v2982_v14 = vpop.eup %2981 }
0x2da1   :  { %1748 = vrot.lane.b32.xlu0 %v2982_v14, %s3214_s12 }
0x2e13   :  { %v1749_v16 = vpop.permute.xlu0 %1748 }
0x2e14   :  { %v1751_v17 = vmul.f32 %v2980_v9, %v1749_v16 }
0x2e16   :  { %v1752_v29 = vpack.c.bf16 %v1751_v17, %v1751_v17 }
0x2e18   :  { %1754 = vrot.lane.b32.xlu1 %v1752_v29, %s3224_s0 }
0x2e8a   :  { %v1755_v15 = vpop.permute.xlu1 %1754 }
0x2e8b   :  { %2756 = vmatmul.mubr.msk.bf16.vlgmr.msra.gmra.mxu0 %vm184_vm2, %v1755_v15 }
0x2e8c   :  { %2768 = vmatpush3.bf16.msra.mxu0 %v3620_v25  ;;  %2771 = vmatprep.mubr.msk.bf16.mxu0 %vm3222_vm0, %v3221_v0 }
0x2e8d   :  { %2769 = vmatprep.subr.bf16.mxu0 %v3221_v0 }
0x2e90   :  { %2770 = vmatpush3.bf16.msra.mxu0 %v3635_v5 }
0x2e91   :  { %2783 = vmatprep.subr.bf16.mxu0 %v3221_v0 }
0x2f4b   :  { %v1793_v2 = vpop.f32.mrf.mxu0 }
0x2f4c   :  { %v1800_v19 = vrot.slane %v1793_v2, 7 }
0x2f4d   :  { %v2757_v20 = vpop.f32.mrf.mxu0 }
0x2f4e   :  { %v1802_v51 = vadd.f32 %v1800_v19, %v3660_v57 }
0x2f4f   :  { %v1796_v39 = vpop.f32.mrf.mxu0 }
0x2f50   :  { %2983 = vtanh.f32 %v1802_v51  ;;  %v2493_v23 = vmul.f32 -1.442695, %v1802_v51 }
0x2f51   :  { %v2758_v21 = vpop.f32.mrf.mxu0 }
0x2f52   :  { %2985 = vpow2.f32 %v2493_v23 }
0x2f5d   :  { %v2984_v22 = vpop.eup %2983 }
0x2f5e   :  { %1815 = vrot.lane.b32.xlu0 %v2984_v22, %s3214_s12 }
0x2f5f   :  { %v2986_v24 = vpop.eup %2985 }
0x2f60   :  { %v1806_v26 = vadd.f32 1.0, %v2986_v24 }
0x2f62   :  { %2987 = vrcp.f32 %v1806_v26 }
0x2f6f   :  { %v2988_v27 = vpop.eup %2987 }
0x2f70   :  { %v1813_v32 = vmul.f32 %v2988_v27, %v1811_v31 }
0x2fd0   :  { %v1816_v28 = vpop.permute.xlu0 %1815 }
0x2fd1   :  { %v1818_v30 = vmul.f32 %v2988_v27, %v1816_v28 }
0x2fd3   :  { %1820 = vrot.lane.b32.xlu1 %v1818_v30, %s3224_s0 }
0x3045   :  { %v1821_v33 = vpop.permute.xlu1 %1820 }
0x3046   :  { %v1823_v34 = vadd.f32 %v1821_v33, %v1813_v32 }
0x3048   :  { %2989 = vtanh.f32 %v1823_v34  ;;  %v1891_v50 = vrot.slane %v1823_v34, 7 }
0x3055   :  { %v2990_v35 = vpop.eup %2989 }
0x3056   :  { %1826 = vrot.lane.b32.xlu0 %v2990_v35, %s3214_s12 }
0x30c8   :  { %v1827_v36 = vpop.permute.xlu0 %1826 }
0x30c9   :  { %v1829_v38 = vmul.f32 %v2988_v27, %v1827_v36 }
0x30cb   :  { %v1830_v18 = vpack.c.bf16 %v1829_v38, %v1829_v38 }
0x30cd   :  { %v1832_v40 = vshrl.u32 %v1830_v18, 16 }
0x30cf   :  { %1834 = vrot.lane.b32.xlu1 %v1832_v40, %s3224_s0 }
0x3141   :  { %v1835_v53 = vpop.permute.xlu1 %1834 }
0x3142   :  { %2764 = vmatmul.mubr.msk.bf16.vlgmr.msra.gmra.mxu1 %vm184_vm2, %v1835_v53 }
0x3143   :  { %2776 = vmatpush3.bf16.msra.mxu1 %v3620_v25  ;;  %2779 = vmatprep.mubr.msk.bf16.mxu1 %vm3222_vm0, %v3221_v0 }
0x3144   :  { %2777 = vmatprep.subr.bf16.mxu1 %v3221_v0 }
0x3147   :  { %2778 = vmatpush3.bf16.msra.mxu1 %v3635_v5 }
0x3148   :  { %2791 = vmatprep.subr.bf16.mxu1 %v3221_v0 }
0x3202   :  { %v1873_v37 = vpop.f32.mrf.mxu1 }
0x3203   :  { %v1880_v41 = vrot.slane %v1873_v37, 6 }
0x3204   :  { %v2765_v42 = vpop.f32.mrf.mxu1 }
0x3205   :  { %v1882_v43 = vadd.f32 %v1880_v41, %v3660_v57 }
0x3206   :  { %v1876_v3 = vpop.f32.mrf.mxu1 }
0x3207   :  { %2991 = vtanh.f32 %v1882_v43  ;;  %v2495_v1 = vmul.f32 -1.442695, %v1882_v43 }
0x3208   :  { %v2766_v63 = vpop.f32.mrf.mxu1 }
0x3209   :  { %2993 = vpow2.f32 %v2495_v1 }
0x3214   :  { %v2992_v44 = vpop.eup %2991 }
0x3215   :  { %1895 = vrot.lane.b32.xlu0 %v2992_v44, %s3214_s12 }
0x3216   :  { %v2994_v45 = vpop.eup %2993 }
0x3217   :  { %v1886_v46 = vadd.f32 1.0, %v2994_v45 }
0x3219   :  { %2995 = vrcp.f32 %v1886_v46 }
0x3226   :  { %v2996_v47 = vpop.eup %2995 }
0x3227   :  { %v1893_v52 = vmul.f32 %v2996_v47, %v1891_v50 }
0x3287   :  { %v1896_v48 = vpop.permute.xlu0 %1895 }
0x3288   :  { %v1898_v49 = vmul.f32 %v2996_v47, %v1896_v48 }
0x328a   :  { %1900 = vrot.lane.b32.xlu1 %v1898_v49, %s3224_s0 }
0x32fc   :  { %v1901_v54 = vpop.permute.xlu1 %1900 }
0x32fd   :  { %v1903_v55 = vadd.f32 %v1901_v54, %v1893_v52 }
0x32ff   :  { %2997 = vtanh.f32 %v1903_v55  ;;  %v1970_v15 = vrot.slane %v1903_v55, 7 }
0x330c   :  { %v2998_v56 = vpop.eup %2997 }
0x330d   :  { %1906 = vrot.lane.b32.xlu0 %v2998_v56, %s3214_s12 }
0x337f   :  { %v1907_v58 = vpop.permute.xlu0 %1906 }
0x3380   :  { %v1909_v59 = vmul.f32 %v2996_v47, %v1907_v58 }
0x3382   :  { %v1910_v60 = vpack.c.bf16 %v1909_v59, %v1909_v59 }
0x3384   :  { %v1912_v61 = vrot.slane %v1910_v60, 1 }
0x3386   :  { %1913 = vrot.lane.b32.xlu1 %v1912_v61, %s3224_s0 }
0x33f8   :  { %v1914_v62 = vpop.permute.xlu1 %1913 }
0x33f9   :  { %2772 = vmatmul.mubr.msk.bf16.vlgmr.msra.gmra.mxu0 %vm184_vm2, %v1914_v62 }
0x33fa   :  { %2784 = vmatpush3.bf16.msra.mxu0 %v3620_v25  ;;  %2787 = vmatprep.mubr.msk.bf16.mxu0 %vm3222_vm0, %v3221_v0 }
0x33fb   :  { %2785 = vmatprep.subr.bf16.mxu0 %v3221_v0 }
0x33fe   :  { %2786 = vmatpush3.bf16.msra.mxu0 %v3635_v5 }
0x33ff   :  { %2799 = vmatprep.subr.bf16.mxu0 %v3221_v0 }
0x34b9   :  { %v1952_v4 = vpop.f32.mrf.mxu0 }
0x34ba   :  { %v1959_v6 = vrot.slane %v1952_v4, 5 }
0x34bb   :  { %v2773_v7 = vpop.f32.mrf.mxu0 }
0x34bc   :  { %v1961_v9 = vadd.f32 %v1959_v6, %v3660_v57 }
0x34bd   :  { %v1955_v10 = vpop.f32.mrf.mxu0 }
0x34be   :  { %2999 = vtanh.f32 %v1961_v9  ;;  %v2497_v8 = vmul.f32 -1.442695, %v1961_v9 }
0x34bf   :  { %v2774_v11 = vpop.f32.mrf.mxu0 }
0x34c0   :  { %3001 = vpow2.f32 %v2497_v8 }
0x34cb   :  { %v3000_v12 = vpop.eup %2999 }
0x34cc   :  { %1974 = vrot.lane.b32.xlu0 %v3000_v12, %s3214_s12 }
0x34cd   :  { %v3002_v13 = vpop.eup %3001 }
0x34ce   :  { %v1965_v14 = vadd.f32 1.0, %v3002_v13 }
0x34d0   :  { %3003 = vrcp.f32 %v1965_v14 }
0x34dd   :  { %v3004_v16 = vpop.eup %3003 }
0x34de   :  { %v1972_v2 = vmul.f32 %v3004_v16, %v1970_v15 }
0x353e   :  { %v1975_v17 = vpop.permute.xlu0 %1974 }
0x353f   :  { %v1977_v29 = vmul.f32 %v3004_v16, %v1975_v17 }
0x3541   :  { %1979 = vrot.lane.b32.xlu1 %v1977_v29, %s3224_s0 }
0x35b3   :  { %v1980_v19 = vpop.permute.xlu1 %1979 }
0x35b4   :  { %v1982_v20 = vadd.f32 %v1980_v19, %v1972_v2 }
0x35b6   :  { %3005 = vtanh.f32 %v1982_v20  ;;  %v2051_v37 = vrot.slane %v1982_v20, 7 }
0x35c3   :  { %v3006_v51 = vpop.eup %3005 }
0x35c4   :  { %1985 = vrot.lane.b32.xlu0 %v3006_v51, %s3214_s12 }
0x3636   :  { %v1986_v39 = vpop.permute.xlu0 %1985 }
0x3637   :  { %v1988_v21 = vmul.f32 %v3004_v16, %v1986_v39 }
0x3639   :  { %v1989_v22 = vpack.c.bf16 %v1988_v21, %v1988_v21 }
0x363b   :  { %v1991_v23 = vshrl.u32 %v1989_v22, 16 }
0x363d   :  { %v1993_v24 = vrot.slane %v1991_v23, 1 }
0x363f   :  { %1994 = vrot.lane.b32.xlu1 %v1993_v24, %s3224_s0 }
0x36b1   :  { %v1995_v26 = vpop.permute.xlu1 %1994 }
0x36b2   :  { %2780 = vmatmul.mubr.msk.bf16.vlgmr.msra.gmra.mxu1 %vm184_vm2, %v1995_v26 }
0x36b3   :  { %2792 = vmatpush3.bf16.msra.mxu1 %v3620_v25  ;;  %2795 = vmatprep.mubr.msk.bf16.mxu1 %vm3222_vm0, %v3221_v0 }
0x36b4   :  { %2793 = vmatprep.subr.bf16.mxu1 %v3221_v0 }
0x36b7   :  { %2794 = vmatpush3.bf16.msra.mxu1 %v3635_v5 }
0x36b8   :  { %2807 = vmatprep.subr.bf16.mxu1 %v3221_v0 }
0x3772   :  { %v2033_v27 = vpop.f32.mrf.mxu1 }
0x3773   :  { %v2040_v28 = vrot.slane %v2033_v27, 4 }
0x3774   :  { %v2781_v30 = vpop.f32.mrf.mxu1 }
0x3775   :  { %v2042_v31 = vadd.f32 %v2040_v28, %v3660_v57 }
0x3776   :  { %v2036_v32 = vpop.f32.mrf.mxu1 }
0x3777   :  { %3007 = vtanh.f32 %v2042_v31  ;;  %v2499_v35 = vmul.f32 -1.442695, %v2042_v31 }
0x3778   :  { %v2782_v33 = vpop.f32.mrf.mxu1 }
0x3779   :  { %3009 = vpow2.f32 %v2499_v35 }
0x3784   :  { %v3008_v34 = vpop.eup %3007 }
0x3785   :  { %2055 = vrot.lane.b32.xlu0 %v3008_v34, %s3214_s12 }
0x3786   :  { %v3010_v36 = vpop.eup %3009 }
0x3787   :  { %v2046_v38 = vadd.f32 1.0, %v3010_v36 }
0x3789   :  { %3011 = vrcp.f32 %v2046_v38 }
0x3796   :  { %v3012_v18 = vpop.eup %3011 }
0x3797   :  { %v2053_v41 = vmul.f32 %v3012_v18, %v2051_v37 }
0x37f7   :  { %v2056_v40 = vpop.permute.xlu0 %2055 }
0x37f8   :  { %v2058_v53 = vmul.f32 %v3012_v18, %v2056_v40 }
0x37fa   :  { %2060 = vrot.lane.b32.xlu1 %v2058_v53, %s3224_s0 }
0x386c   :  { %v2061_v42 = vpop.permute.xlu1 %2060 }
0x386d   :  { %v2063_v43 = vadd.f32 %v2061_v42, %v2053_v41 }
0x386f   :  { %3013 = vtanh.f32 %v2063_v43 }
0x387c   :  { %v3014_v3 = vpop.eup %3013 }
0x387d   :  { %2066 = vrot.lane.b32.xlu0 %v3014_v3, %s3214_s12 }
0x38ef   :  { %v2067_v63 = vpop.permute.xlu0 %2066 }
0x38f0   :  { %v2069_v44 = vmul.f32 %v3012_v18, %v2067_v63 }
0x38f2   :  { %v2070_v1 = vpack.c.bf16 %v2069_v44, %v2069_v44 }
0x38f4   :  { %v2072_v45 = vrot.slane %v2070_v1, 2 }
0x38f6   :  { %2073 = vrot.lane.b32.xlu1 %v2072_v45, %s3224_s0 }
0x3968   :  { %v2074_v46 = vpop.permute.xlu1 %2073 }
0x3969   :  { %2788 = vmatmul.mubr.msk.bf16.vlgmr.msra.gmra.mxu0 %vm184_vm2, %v2074_v46 }
0x396a   :  { %2800 = vmatpush3.bf16.msra.mxu0 %v3620_v25  ;;  %2803 = vmatprep.mubr.msk.bf16.mxu0 %vm3222_vm0, %v3221_v0 }
0x396b   :  { %2801 = vmatprep.subr.bf16.mxu0 %v3221_v0 }
0x396e   :  { %2802 = vmatpush3.bf16.msra.mxu0 %v3635_v5  ;;  %v2130_v5 = vrot.slane %v2063_v43, 7 }
0x3a29   :  { %v2112_v47 = vpop.f32.mrf.mxu0 }
0x3a2a   :  { %v2119_v48 = vrot.slane %v2112_v47, 3 }
0x3a2b   :  { %v2789_v49 = vpop.f32.mrf.mxu0 }
0x3a2c   :  { %v2121_v50 = vadd.f32 %v2119_v48, %v3660_v57  ;;  %v2845_v48 = vld [vmem:[#allocation11 + $0x8] sm:$0xff]   ;;  %v2846_v49 = vld [vmem:[#allocation11] sm:$0xff]  }
0x3a2d   :  { %v2115_v52 = vpop.f32.mrf.mxu0 }
0x3a2e   :  { %3015 = vtanh.f32 %v2121_v50  ;;  %v2501_v56 = vmul.f32 -1.442695, %v2121_v50 }
0x3a2f   :  { %v2790_v54 = vpop.f32.mrf.mxu0 }
0x3a30   :  { %3017 = vpow2.f32 %v2501_v56 }
0x3a3b   :  { %v3016_v55 = vpop.eup %3015 }
0x3a3c   :  { %2134 = vrot.lane.b32.xlu0 %v3016_v55, %s3214_s12 }
0x3a3d   :  { %v3018_v25 = vpop.eup %3017 }
0x3a3e   :  { %v2125_v58 = vadd.f32 1.0, %v3018_v25 }
0x3a40   :  { %3019 = vrcp.f32 %v2125_v58 }
0x3a4d   :  { %v3020_v59 = vpop.eup %3019 }
0x3a4e   :  { %v2132_v62 = vmul.f32 %v3020_v59, %v2130_v5 }
0x3aae   :  { %v2135_v60 = vpop.permute.xlu0 %2134 }
0x3aaf   :  { %v2137_v61 = vmul.f32 %v3020_v59, %v2135_v60  ;;  %v2314_v60 = vld [vmem:[#allocation12] sm:$0x1] }
0x3ab1   :  { %2139 = vrot.lane.b32.xlu1 %v2137_v61, %s3224_s0 }
0x3b23   :  { %v2140_v4 = vpop.permute.xlu1 %2139 }
0x3b24   :  { %v2142_v6 = vadd.f32 %v2140_v4, %v2132_v62 }
0x3b26   :  { %3021 = vtanh.f32 %v2142_v6  ;;  %v2211_v24 = vrot.slane %v2142_v6, 7 }
0x3b33   :  { %v3022_v7 = vpop.eup %3021 }
0x3b34   :  { %2145 = vrot.lane.b32.xlu0 %v3022_v7, %s3214_s12 }
0x3ba6   :  { %v2146_v9 = vpop.permute.xlu0 %2145 }
0x3ba7   :  { %v2148_v10 = vmul.f32 %v3020_v59, %v2146_v9  ;;  %v3225_v59 = vmov 1  }
0x3ba8   :  { %2832 = vset.pattern.permute.xlu1 %v3225_v59 }
0x3ba9   :  { %v2149_v11 = vpack.c.bf16 %v2148_v10, %v2148_v10 }
0x3bab   :  { %v2151_v12 = vshrl.u32 %v2149_v11, 16  ;;  %v2378_v11 = vld [vmem:[#allocation3] sm:$0x1] }
0x3bad   :  { %v2153_v8 = vrot.slane %v2151_v12, 2 }
0x3baf   :  { %2154 = vrot.lane.b32.xlu1 %v2153_v8, %s3224_s0 }
0x3c21   :  { %v2155_v13 = vpop.permute.xlu1 %2154 }
0x3c22   :  { %2796 = vmatmul.mubr.msk.bf16.vlgmr.msra.gmra.mxu1 %vm184_vm2, %v2155_v13 }
0x3c23   :  { %2811 = vmatprep.mubr.msk.bf16.mxu1 %vm3222_vm0, %v3221_v0  ;;  %2808 = vmatpush3.bf16.msra.mxu1 %v2845_v48 }
0x3c24   :  { %2809 = vmatprep.subr.bf16.mxu1 %v3221_v0 }
0x3c27   :  { %2810 = vmatpush3.bf16.msra.mxu1 %v2846_v49 }
0x3ce2   :  { %v2193_v14 = vpop.f32.mrf.mxu1 }
0x3ce3   :  { %v2200_v16 = vrot.slane %v2193_v14, 2 }
0x3ce4   :  { %v2797_v17 = vpop.f32.mrf.mxu1 }
0x3ce5   :  { %v2202_v29 = vadd.f32 %v2200_v16, %v3660_v57 }
0x3ce6   :  { %v2196_v15 = vpop.f32.mrf.mxu1 }
0x3ce7   :  { %3023 = vtanh.f32 %v2202_v29  ;;  %v2503_v20 = vmul.f32 -1.442695, %v2202_v29 }
0x3ce8   :  { %v2798_v2 = vpop.f32.mrf.mxu1 }
0x3ce9   :  { %3025 = vpow2.f32 %v2503_v20 }
0x3cf4   :  { %v3024_v19 = vpop.eup %3023 }
0x3cf5   :  { %2215 = vrot.lane.b32.xlu0 %v3024_v19, %s3214_s12 }
0x3cf6   :  { %v3026_v51 = vpop.eup %3025 }
0x3cf7   :  { %v2206_v39 = vadd.f32 1.0, %v3026_v51 }
0x3cf9   :  { %3027 = vrcp.f32 %v2206_v39 }
0x3d06   :  { %v3028_v21 = vpop.eup %3027 }
0x3d07   :  { %v2213_v26 = vmul.f32 %v3028_v21, %v2211_v24 }
0x3d67   :  { %v2216_v22 = vpop.permute.xlu0 %2215 }
0x3d68   :  { %v2218_v23 = vmul.f32 %v3028_v21, %v2216_v22 }
0x3d6a   :  { %2220 = vrot.lane.b32.xlu1 %v2218_v23, %s3224_s0 }
0x3ddc   :  { %v2221_v27 = vpop.permute.xlu1 %2220 }
0x3ddd   :  { %v2223_v28 = vadd.f32 %v2221_v27, %v2213_v26 }
0x3ddf   :  { %3029 = vtanh.f32 %v2223_v28  ;;  %v2290_v45 = vrot.slane %v2223_v28, 7 }
0x3dec   :  { %v3030_v30 = vpop.eup %3029 }
0x3ded   :  { %2226 = vrot.lane.b32.xlu0 %v3030_v30, %s3214_s12 }
0x3e5f   :  { %v2227_v31 = vpop.permute.xlu0 %2226 }
0x3e60   :  { %v2229_v32 = vmul.f32 %v3028_v21, %v2227_v31 }
0x3e62   :  { %v2230_v33 = vpack.c.bf16 %v2229_v32, %v2229_v32 }
0x3e64   :  { %v2232_v34 = vrot.slane %v2230_v33, 3 }
0x3e66   :  { %2233 = vrot.lane.b32.xlu1 %v2232_v34, %s3224_s0 }
0x3ed8   :  { %v2234_v35 = vpop.permute.xlu1 %2233 }
0x3ed9   :  { %2804 = vmatmul.mubr.msk.bf16.vlgmr.msra.gmra.mxu0 %vm184_vm2, %v2234_v35 }
0x3f99   :  { %v2272_v36 = vpop.f32.mrf.mxu0 }
0x3f9a   :  { %v2279_v38 = vrot.slane %v2272_v36, 1 }
0x3f9b   :  { %v2805_v18 = vpop.f32.mrf.mxu0 }
0x3f9c   :  { %v2281_v40 = vadd.f32 %v2279_v38, %v3660_v57 }
0x3f9d   :  { %v2275_v53 = vpop.f32.mrf.mxu0 }
0x3f9e   :  { %3031 = vtanh.f32 %v2281_v40  ;;  %v2505_v42 = vmul.f32 -1.442695, %v2281_v40 }
0x3f9f   :  { %v2806_v37 = vpop.f32.mrf.mxu0 }
0x3fa0   :  { %3033 = vpow2.f32 %v2505_v42 }
0x3fab   :  { %v3032_v41 = vpop.eup %3031 }
0x3fac   :  { %2294 = vrot.lane.b32.xlu0 %v3032_v41, %s3214_s12 }
0x3fad   :  { %v3034_v43 = vpop.eup %3033 }
0x3fae   :  { %v2285_v3 = vadd.f32 1.0, %v3034_v43 }
0x3fb0   :  { %3035 = vrcp.f32 %v2285_v3 }
0x3fbd   :  { %v3036_v63 = vpop.eup %3035 }
0x3fbe   :  { %v2292_v46 = vmul.f32 %v3036_v63, %v2290_v45 }
0x401e   :  { %v2295_v44 = vpop.permute.xlu0 %2294 }
0x401f   :  { %v2297_v1 = vmul.f32 %v3036_v63, %v2295_v44 }
0x4021   :  { %2299 = vrot.lane.b32.xlu1 %v2297_v1, %s3224_s0 }
0x4093   :  { %v2300_v47 = vpop.permute.xlu1 %2299 }
0x4094   :  { %v2302_v57 = vadd.f32 %v2300_v47, %v2292_v46 }
0x4096   :  { %3037 = vtanh.f32 %v2302_v57 }
0x40a3   :  { %v3038_v50 = vpop.eup %3037 }
0x40a4   :  { %2305 = vrot.lane.b32.xlu0 %v3038_v50, %s3214_s12  ;;  %s3227_s12 = smov [#allocation14]  }
0x40a5   :  { %s2410_s30 = sshll.u32 %s3227_s12, 4  ;;  %s2411_s30 = int_to_ptr.vmem [resolvable:$true] %s2410_s30 }
0x40a6   :  { %s3161_s1 = scalar_lea.vmem %s2411_s30, 16  ;;  %s3165_s11 = scalar_lea.vmem %s2411_s30, 32 }
0x40a7   :  { %p3162_p2 = scmp.ne.s32.totalorder %s2411_s30, %s3161_s1  ;;  %p3166_p3 = scmp.lt.s32.totalorder %s2411_s30, %s2411_s30 }
0x40a8   :  { %p3167_p4 = scmp.lt.s32.totalorder %s3165_s11, %s3161_s1 }
0x40aa   :  { %p3168_p5 = por %p3167_p4, %p3166_p3 }
0x40ac   :  { %p3169_p6 = pnand %p3168_p5, %p3162_p2 }
0x4116   :  { %v2306_v52 = vpop.permute.xlu0 %2305 }
0x4117   :  { %v2308_v54 = vmul.f32 %v3036_v63, %v2306_v52 }
0x4119   :  { %v2309_v55 = vpack.c.bf16 %v2308_v54, %v2308_v54 }
0x411b   :  { %v2316_v56 = vshrl.u32 %v2309_v55, 16 }
0x411d   :  { %v2318_v25 = vrot.slane %v2316_v56, 3 }
0x411f   :  { %2319 = vrot.lane.b32.xlu1 %v2318_v25, %s3224_s0 }
0x4191   :  { %v2320_v58 = vpop.permute.xlu1 %2319 }
0x4192   :  { %2812 = vmatmul.mubr.msk.bf16.vlgmr.msra.gmra.mxu1 %vm184_vm2, %v2320_v58 }
0x4252   :  { %v2370_v61 = vpop.f32.mrf.mxu1 }
0x4253   :  { %v2371_v5 = vadd.f32 %v2370_v61, %v2314_v60 }
0x4254   :  { %v2813_v0 = vpop.f32.mrf.mxu1 }
0x4255   :  { %v2509_v62 = vclamps-f32 %v2371_v5, 3.0  ;;  %2381 = vperm.xlu0 %2831, %v2371_v5  }
0x4256   :  { %v2373_v4 = vpop.f32.mrf.mxu1 }
0x4257   :  { %v2385_v6 = vsub.f32 0.0, %v2509_v62 }
0x4258   :  { %v2814_v7 = vpop.f32.mrf.mxu1 }
0x4259   :  { %v2386_v9 = vmul.f32 1.442695, %v2385_v6  ;;  %2833 = vset.pattern.permute.xlu0 %v3225_v59 }
0x425b   :  { %3039 = vpow2.f32 %v2386_v9 }
0x4268   :  { %v3040_v10 = vpop.eup %3039 }
0x4269   :  { %2390 = vperm.xlu1 %2832, %v3040_v10  }
0x426d   :  { %2399 = vrot.lane.b32.xlu1 %v2385_v6, %s3226_s4 }
0x42d0   :  { %v2382_v12 = vpop.permute.xlu0 %2381 }
0x42d1   :  { %v2384_v8 = vsub.f32 %v2378_v11, %v2382_v12 }
0x42e4   :  { %v2391_v13 = vpop.permute.xlu1 %2390 }
0x42e5   :  { %v2393_v14 = vmul.f32 %v2391_v13, %v2384_v8 }
0x42e7   :  { %2395 = vst.msk [vmem:[#allocation14] sm:$0x1] %vm2394_vm11, %v2393_v14 }
0x42e8   :  { %v2400_v16 = vpop.permute.xlu1 %2399 }
0x42e9   :  { %3172 = shalt.err (!%p3169_p6)
}
0x42ea   :  { %2413 = dma.vmem_to_hbm [thread:$0]  %s2411_s30, 16, %s3756_s8, [#allocation5]   ;;  %2403 = vst.msk [vmem:[#allocation15] sm:$0x1] %vm2402_vm12, %v2400_v16 }
0x42eb   :  { %s3181_s16 = scalar_lea.vmem %s2421_s10, 16  ;;  %s3185_s17 = scalar_lea.vmem %s2421_s10, 32 }
0x42ec   :  { %p3182_p7 = scmp.ne.s32.totalorder %s2421_s10, %s3181_s16  ;;  %p3186_p8 = scmp.lt.s32.totalorder %s2421_s10, %s2421_s10 }
0x42ed   :  { %p3187_p9 = scmp.lt.s32.totalorder %s3185_s17, %s3181_s16 }
0x42ef   :  { %p3188_p10 = por %p3187_p9, %p3186_p8 }
0x42f1   :  { %p3189_p11 = pnand %p3188_p10, %p3182_p7 }
0x42f3   :  { %3192 = shalt.err (!%p3189_p11)
}
0x42f4   :  { %2423 = dma.vmem_to_hbm [thread:$0]  %s2421_s10, 16, %s3757_s9, [#allocation16]  }
0x42f5   :  { %3209 = dma.done.wait [#allocation5], 16  }
0x42f6   :  { %3210 = vsyncadd [#allocation5], 4294967280 }
0x42f7   :  { %3211 = dma.done.wait [#allocation16], 16  }
0x42f8   :  { %3212 = vsyncadd [#allocation16], 4294967280 }
0x42f9   :  { %2430 = vsyncpa [#allocation4], 1 }
0x42fa   :  { %2431 = vsyncpa [#allocation7], 1 }
0x42fb   :  { %2432 = vsyncpa [#allocation10], 1 }
0x42fc   :  { %2433 = vsyncpa [#allocation13], 1 }
0x42fd   :  { %2434 = vsyncpa [#allocation5], 1 }
0x42fe   :  { %2435 = vsyncpa [#allocation16], 1 }

</bundles_post_ra>
